<compile_context>
chip_gen: v7x
topology: tpu7x:2x2x1
jax: 0.10.0
libtpu: 0.0.40
codegen_flags: <defaults>
</compile_context>

<pallas_src>
import functools

import jax
import jax.numpy as jnp
from jax.experimental import pallas as pl
from jax.experimental.pallas import tpu as pltpu

STATUS_SPACE_LEN = 8
HIDDEN1 = 500
HIDDEN2 = 400
ACTION_SPACE_LEN = 4

# Zero-padded (lane-aligned) sizes used inside the kernel.
HIDDEN1_PAD = 512
HIDDEN2_PAD = 512
ACTION_PAD = 128   # lane-dense output block (only first 4 columns are real)


def _detect_tpu_tiling():
    """Per-generation (TM cap, two-TensorCore?, vmem_limit_bytes)."""
    try:
        kind = jax.devices()[0].device_kind.lower()
    except Exception:  # pragma: no cover - defensive
        kind = ""
    if "v7" in kind:
        # 64 MiB VMEM per TC, 2 TCs/chip: cap TM at 2048, ensure >=2 steps.
        return 2048, True, 48 * 1024 * 1024
    if "v6" in kind:
        # 128 MiB VMEM: TM=4096 (~35 MiB live) drops per-step overhead ~10%.
        return 4096, False, 64 * 1024 * 1024
    if "v5 lite" in kind or "v5lite" in kind or "v5e" in kind:
        # 197 TF/s MXU: step overhead already small at TM=1024.
        return 1024, False, 32 * 1024 * 1024
    # Unknown / v4 / v5p: conservative but still large tiles.
    return 2048, False, 48 * 1024 * 1024


_TM_CAP, _TWO_TC, _VMEM_LIMIT = _detect_tpu_tiling()


def _mlp_kernel(x_ref, w1_ref, b1_ref, w2_ref, b2_ref, w3_ref, b3_ref, o_ref):
    # Layer 1: (TM, 8) bf16 @ (8, 512) bf16 -> f32 acc; bias+ReLU in f32.
    h1 = jnp.dot(x_ref[...], w1_ref[...], preferred_element_type=jnp.float32)
    h1 = jnp.maximum(h1 + b1_ref[...], 0.0).astype(jnp.bfloat16)
    # Layer 2: (TM, 512) bf16 @ (512, 512) bf16 -> f32 acc; bias+ReLU in f32.
    h2 = jnp.dot(h1, w2_ref[...], preferred_element_type=jnp.float32)
    h2 = jnp.maximum(h2 + b2_ref[...], 0.0).astype(jnp.bfloat16)
    # Layer 3: (TM, 512) bf16 @ (512, 128) bf16 -> f32 acc; bias in f32.
    # Full 128-lane block written (lane-dense unmasked store); cols 4..127 are
    # zero by construction and sliced off in the wrapper.
    o = jnp.dot(h2, w3_ref[...], preferred_element_type=jnp.float32)
    o_ref[...] = (o + b3_ref[...]).astype(o_ref.dtype)


def _round_up(x, m):
    return ((x + m - 1) // m) * m


def _cdiv(a, b):
    return (a + b - 1) // b


def _choose_tiling(batch):
    """Pick (TM, padded_batch) minimizing pad waste under the per-gen TM cap.

    On two-TC parts (v7x) force >= 2 grid steps for B > 256 so both
    TensorCores get work under the "parallel" batch axis.
    """
    min_steps = 2 if (_TWO_TC and batch > 256) else 1
    n_steps = max(_cdiv(batch, _TM_CAP), min_steps)
    tm = max(128, _round_up(_cdiv(batch, n_steps), 128))
    n_steps = max(_cdiv(batch, tm), min_steps)
    return tm, tm * n_steps


@functools.partial(jax.jit, static_argnames=("tm",))
def _dqnll_forward_padded(x_pad, kp, tm):
    b_pad = x_pad.shape[0]
    grid = (_cdiv(b_pad, tm),)

    in_specs = [
        # x: streamed over the batch grid; feature dim kept at 8 (no HBM pad).
        pl.BlockSpec((tm, STATUS_SPACE_LEN), lambda i: (i, 0)),
        # Weights / biases: constant index_map -> VMEM-resident across steps.
        pl.BlockSpec((STATUS_SPACE_LEN, HIDDEN1_PAD), lambda i: (0, 0)),
        pl.BlockSpec((1, HIDDEN1_PAD), lambda i: (0, 0)),
        pl.BlockSpec((HIDDEN1_PAD, HIDDEN2_PAD), lambda i: (0, 0)),
        pl.BlockSpec((1, HIDDEN2_PAD), lambda i: (0, 0)),
        pl.BlockSpec((HIDDEN2_PAD, ACTION_PAD), lambda i: (0, 0)),
        pl.BlockSpec((1, ACTION_PAD), lambda i: (0, 0)),
    ]
    # Lane-dense output block (TM, 128): unmasked vst + contiguous writeback.
    out_specs = pl.BlockSpec((tm, ACTION_PAD), lambda i: (i, 0))

    # TODO(synk): if xprof shows the "parallel" axis not sharded across v7x's
    # two TensorCores, switch to pltpu.CORE_PARALLEL here.
    return pl.pallas_call(
        _mlp_kernel,
        out_shape=jax.ShapeDtypeStruct((b_pad, ACTION_PAD), jnp.float32),
        grid=grid,
        in_specs=in_specs,
        out_specs=out_specs,
        compiler_params=pltpu.CompilerParams(
            dimension_semantics=("parallel",),
            vmem_limit_bytes=_VMEM_LIMIT),
    )(x_pad, kp["w1"], kp["b1"], kp["w2"], kp["b2"], kp["w3"], kp["b3"])


def dqnll_forward(x, kernel_params):
    """Fused 3-layer MLP forward.

    x: (B, 8) float32 (any B)
    kernel_params: output of prepare_kernel_params()
    returns: (B, 4) float32
    """
    batch = x.shape[0]
    tm, b_pad = _choose_tiling(batch)

    x_bf16 = x.astype(jnp.bfloat16)
    if b_pad != batch:
        x_bf16 = jnp.pad(x_bf16, ((0, b_pad - batch), (0, 0)))

    out = _dqnll_forward_padded(x_bf16, kernel_params, tm)
    return out[:batch, :ACTION_SPACE_LEN]


def init_params(key):
    """PyTorch nn.Linear-style init: U(-1/sqrt(fan_in), +1/sqrt(fan_in))."""
    ks = jax.random.split(key, 6)

    def lin(kw, kb, fan_in, fan_out):
        bound = 1.0 / jnp.sqrt(jnp.float32(fan_in))
        w = jax.random.uniform(kw, (fan_in, fan_out), jnp.float32, -bound, bound)
        b = jax.random.uniform(kb, (1, fan_out), jnp.float32, -bound, bound)
        return w, b

    w1, b1 = lin(ks[0], ks[1], STATUS_SPACE_LEN, HIDDEN1)
    w2, b2 = lin(ks[2], ks[3], HIDDEN1, HIDDEN2)
    w3, b3 = lin(ks[4], ks[5], HIDDEN2, ACTION_SPACE_LEN)
    return dict(w1=w1, b1=b1, w2=w2, b2=b2, w3=w3, b3=b3)


def prepare_kernel_params(params):
    """Zero-pad hidden dims to 512, action dim to 128, cast matmul operands to
    bf16. Biases stay f32 (bias-add happens on the f32 accumulator)."""
    p1 = HIDDEN1_PAD - HIDDEN1            # 12
    p2 = HIDDEN2_PAD - HIDDEN2            # 112
    p3 = ACTION_PAD - ACTION_SPACE_LEN    # 124
    w1 = jnp.pad(params["w1"], ((0, 0), (0, p1))).astype(jnp.bfloat16)
    b1 = jnp.pad(params["b1"], ((0, 0), (0, p1)))
    w2 = jnp.pad(params["w2"], ((0, p1), (0, p2))).astype(jnp.bfloat16)
    b2 = jnp.pad(params["b2"], ((0, 0), (0, p2)))
    w3 = jnp.pad(params["w3"], ((0, p2), (0, p3))).astype(jnp.bfloat16)
    b3 = jnp.pad(params["b3"], ((0, 0), (0, p3)))
    return dict(w1=w1, b1=b1, w2=w2, b2=b2, w3=w3, b3=b3)


def _reference_bf16(x, p):
    """Matches the kernel's numerics: bf16 operands, f32 accumulation."""
    xb = x.astype(jnp.bfloat16)
    h1 = jnp.dot(xb, p["w1"].astype(jnp.bfloat16),
                 preferred_element_type=jnp.float32) + p["b1"]
    h1 = jnp.maximum(h1, 0.0).astype(jnp.bfloat16)
    h2 = jnp.dot(h1, p["w2"].astype(jnp.bfloat16),
                 preferred_element_type=jnp.float32) + p["b2"]
    h2 = jnp.maximum(h2, 0.0).astype(jnp.bfloat16)
    return jnp.dot(h2, p["w3"].astype(jnp.bfloat16),
                   preferred_element_type=jnp.float32) + p["b3"]


def _reference_f32(x, p):
    h1 = jnp.maximum(x @ p["w1"] + p["b1"], 0.0)
    h2 = jnp.maximum(h1 @ p["w2"] + p["b2"], 0.0)
    return h2 @ p["w3"] + p["b3"]


if __name__ == "__main__":
    key = jax.random.PRNGKey(0)
    k_param, k_x = jax.random.split(key)

    params = init_params(k_param)
    kernel_params = prepare_kernel_params(params)

    # Small deterministic input (single tile path).
    batch = 8
    x = jax.random.normal(k_x, (batch, STATUS_SPACE_LEN), jnp.float32)

    out = dqnll_forward(x, kernel_params)
    out = jax.block_until_ready(out)
    assert out.shape == (batch, ACTION_SPACE_LEN)

    # Tight check against a numerics-matched (bf16 operand, f32 accum) reference.
    ref_bf16 = _reference_bf16(x, params)
    assert jnp.allclose(out, ref_bf16, atol=2e-2, rtol=2e-2)

    # Loose sanity check against the full-f32 PyTorch-equivalent reference.
    ref_f32 = _reference_f32(x, params)
    assert jnp.allclose(out, ref_f32, atol=5e-2, rtol=5e-2)

    # Exercise the multi-tile / batch-remainder path (pad + slice correctness).
    batch2 = 300
    x2 = jax.random.normal(jax.random.PRNGKey(1), (batch2, STATUS_SPACE_LEN),
                           jnp.float32)
    out2 = jax.block_until_ready(dqnll_forward(x2, kernel_params))
    assert out2.shape == (batch2, ACTION_SPACE_LEN)
    assert jnp.allclose(out2, _reference_bf16(x2, params), atol=2e-2, rtol=2e-2)

    print("KERNEL_OK")
</pallas_src>

<mosaic_0001>
module attributes {stable_mosaic.version = 11 : i64} {
  func.func @_mlp_kernel(%arg0: i32, %arg1: memref<128x8xbf16, #tpu.memory_space<vmem>>, %arg2: memref<8x512xbf16, #tpu.memory_space<vmem>>, %arg3: memref<1x512xf32, #tpu.memory_space<vmem>>, %arg4: memref<512x512xbf16, #tpu.memory_space<vmem>>, %arg5: memref<1x512xf32, #tpu.memory_space<vmem>>, %arg6: memref<512x128xbf16, #tpu.memory_space<vmem>>, %arg7: memref<1x128xf32, #tpu.memory_space<vmem>>, %arg8: memref<128x128xf32, #tpu.memory_space<vmem>>) attributes {dimension_semantics = [#tpu.dimension_semantics<parallel>], iteration_bounds = array<i64: 1>, scalar_prefetch = 0 : i64, scratch_operands = 0 : i64, tpu.core_type = #tpu.core_type<tc>, window_params = [{transform_indices = @transform_0, window_bounds = array<i64: 128, 8>}, {pipeline_mode = #tpu.pipeline_mode<synchronous>, transform_indices = @transform_1, window_bounds = array<i64: 8, 512>}, {pipeline_mode = #tpu.pipeline_mode<synchronous>, transform_indices = @transform_2, window_bounds = array<i64: 1, 512>}, {pipeline_mode = #tpu.pipeline_mode<synchronous>, transform_indices = @transform_3, window_bounds = array<i64: 512, 512>}, {pipeline_mode = #tpu.pipeline_mode<synchronous>, transform_indices = @transform_4, window_bounds = array<i64: 1, 512>}, {pipeline_mode = #tpu.pipeline_mode<synchronous>, transform_indices = @transform_5, window_bounds = array<i64: 512, 128>}, {pipeline_mode = #tpu.pipeline_mode<synchronous>, transform_indices = @transform_6, window_bounds = array<i64: 1, 128>}, {transform_indices = @transform_7, window_bounds = array<i64: 128, 128>}]} {
    %c0 = arith.constant 0 : index
    %c0_0 = arith.constant 0 : index
    %0 = vector.load %arg1[%c0, %c0_0] : memref<128x8xbf16, #tpu.memory_space<vmem>>, vector<128x8xbf16>
    %c0_1 = arith.constant 0 : index
    %c0_2 = arith.constant 0 : index
    %1 = vector.load %arg2[%c0_1, %c0_2] : memref<8x512xbf16, #tpu.memory_space<vmem>>, vector<8x512xbf16>
    %cst = arith.constant dense<0.000000e+00> : vector<128x512xf32>
    %2 = tpu.matmul %0, %1, %cst {dimension_numbers = #tpu.dot_dimension_numbers<[1], [0], [0], [1], [0, 0, 1, 1], [], []>} : vector<128x8xbf16>, vector<8x512xbf16>, vector<128x512xf32> -> vector<128x512xf32>
    %c0_3 = arith.constant 0 : index
    %c0_4 = arith.constant 0 : index
    %3 = vector.load %arg3[%c0_3, %c0_4] : memref<1x512xf32, #tpu.memory_space<vmem>>, vector<1x512xf32>
    %4 = vector.broadcast %3 : vector<1x512xf32> to vector<128x512xf32>
    %5 = arith.addf %2, %4 : vector<128x512xf32>
    %cst_5 = arith.constant 0.000000e+00 : f32
    %6 = vector.broadcast %cst_5 : f32 to vector<128x512xf32>
    %7 = arith.maximumf %5, %6 : vector<128x512xf32>
    %8 = arith.truncf %7 : vector<128x512xf32> to vector<128x512xbf16>
    %c0_6 = arith.constant 0 : index
    %c0_7 = arith.constant 0 : index
    %9 = vector.load %arg4[%c0_6, %c0_7] : memref<512x512xbf16, #tpu.memory_space<vmem>>, vector<512x512xbf16>
    %cst_8 = arith.constant dense<0.000000e+00> : vector<128x512xf32>
    %10 = tpu.matmul %8, %9, %cst_8 {dimension_numbers = #tpu.dot_dimension_numbers<[1], [0], [0], [1], [0, 0, 1, 1], [], []>} : vector<128x512xbf16>, vector<512x512xbf16>, vector<128x512xf32> -> vector<128x512xf32>
    %c0_9 = arith.constant 0 : index
    %c0_10 = arith.constant 0 : index
    %11 = vector.load %arg5[%c0_9, %c0_10] : memref<1x512xf32, #tpu.memory_space<vmem>>, vector<1x512xf32>
    %12 = vector.broadcast %11 : vector<1x512xf32> to vector<128x512xf32>
    %13 = arith.addf %10, %12 : vector<128x512xf32>
    %cst_11 = arith.constant 0.000000e+00 : f32
    %14 = vector.broadcast %cst_11 : f32 to vector<128x512xf32>
    %15 = arith.maximumf %13, %14 : vector<128x512xf32>
    %16 = arith.truncf %15 : vector<128x512xf32> to vector<128x512xbf16>
    %c0_12 = arith.constant 0 : index
    %c0_13 = arith.constant 0 : index
    %17 = vector.load %arg6[%c0_12, %c0_13] : memref<512x128xbf16, #tpu.memory_space<vmem>>, vector<512x128xbf16>
    %cst_14 = arith.constant dense<0.000000e+00> : vector<128x128xf32>
    %18 = tpu.matmul %16, %17, %cst_14 {dimension_numbers = #tpu.dot_dimension_numbers<[1], [0], [0], [1], [0, 0, 1, 1], [], []>} : vector<128x512xbf16>, vector<512x128xbf16>, vector<128x128xf32> -> vector<128x128xf32>
    %c0_15 = arith.constant 0 : index
    %c0_16 = arith.constant 0 : index
    %19 = vector.load %arg7[%c0_15, %c0_16] : memref<1x128xf32, #tpu.memory_space<vmem>>, vector<1x128xf32>
    %20 = vector.broadcast %19 : vector<1x128xf32> to vector<128x128xf32>
    %21 = arith.addf %18, %20 : vector<128x128xf32>
    %c0_17 = arith.constant 0 : index
    %c0_18 = arith.constant 0 : index
    %22 = vector.load %arg8[%c0_17, %c0_18] : memref<128x128xf32, #tpu.memory_space<vmem>>, vector<128x128xf32>
    tpu.vector_store %arg8[%c0_17, %c0_18], %21 {strides = array<i32>} : memref<128x128xf32, #tpu.memory_space<vmem>>, vector<128x128xf32>,
    return
  }
  func.func @transform_0(%arg0: i32) -> (i32, i32) {
    %c0_i32 = arith.constant 0 : i32
    %c0_i32_0 = arith.constant 0 : i32
    return %arg0, %c0_i32 : i32, i32
  }
  func.func @transform_1(%arg0: i32) -> (i32, i32) {
    %c0_i32 = arith.constant 0 : i32
    %c0_i32_0 = arith.constant 0 : i32
    %c0_i32_1 = arith.constant 0 : i32
    return %c0_i32, %c0_i32_0 : i32, i32
  }
  func.func @transform_2(%arg0: i32) -> (i32, i32) {
    %c0_i32 = arith.constant 0 : i32
    %c0_i32_0 = arith.constant 0 : i32
    %c0_i32_1 = arith.constant 0 : i32
    return %c0_i32, %c0_i32_0 : i32, i32
  }
  func.func @transform_3(%arg0: i32) -> (i32, i32) {
    %c0_i32 = arith.constant 0 : i32
    %c0_i32_0 = arith.constant 0 : i32
    %c0_i32_1 = arith.constant 0 : i32
    return %c0_i32, %c0_i32_0 : i32, i32
  }
  func.func @transform_4(%arg0: i32) -> (i32, i32) {
    %c0_i32 = arith.constant 0 : i32
    %c0_i32_0 = arith.constant 0 : i32
    %c0_i32_1 = arith.constant 0 : i32
    return %c0_i32, %c0_i32_0 : i32, i32
  }
  func.func @transform_5(%arg0: i32) -> (i32, i32) {
    %c0_i32 = arith.constant 0 : i32
    %c0_i32_0 = arith.constant 0 : i32
    %c0_i32_1 = arith.constant 0 : i32
    return %c0_i32, %c0_i32_0 : i32, i32
  }
  func.func @transform_6(%arg0: i32) -> (i32, i32) {
    %c0_i32 = arith.constant 0 : i32
    %c0_i32_0 = arith.constant 0 : i32
    %c0_i32_1 = arith.constant 0 : i32
    return %c0_i32, %c0_i32_0 : i32, i32
  }
  func.func @transform_7(%arg0: i32) -> (i32, i32) {
    %c0_i32 = arith.constant 0 : i32
    %c0_i32_0 = arith.constant 0 : i32
    return %arg0, %c0_i32 : i32, i32
  }
}

</mosaic_0001>

<bundles_post_ra>
// kernel: _dqnll_forward_padded.1
= control target key start
LH: loop header
LB: loop body
LE: loop exit
PB: predicated region body
PF: predicated region fallthrough
CT: control target
= control target key end

     0   :  { %12 = vsyncpa [#allocation3], 0  ;;  %s3509_s0 = inlined_call_operand.vmem [shape: bf16[128,8], index: 0, kind: input, shape index: {}]   ;;  %s3510_s1 = inlined_call_operand.vmem [shape: bf16[8,512], index: 1, kind: input, shape index: {}]   ;;  %s3511_s2 = inlined_call_operand.vmem [shape: f32[1,512], index: 2, kind: input, shape index: {}]   ;;  %s3512_s3 = inlined_call_operand.hbm [shape: bf16[512,512], index: 3, kind: input, shape index: {}]   ;;  %s3513_s4 = inlined_call_operand.vmem [shape: f32[1,512], index: 4, kind: input, shape index: {}]   ;;  %s3514_s5 = inlined_call_operand.hbm [shape: bf16[512,128], index: 5, kind: input, shape index: {}]   ;;  %s3515_s6 = inlined_call_operand.vmem [shape: f32[1,128], index: 6, kind: input, shape index: {}]   ;;  %s3516_s7 = inlined_call_operand.hbm [shape: f32[128,128], index: 7, kind: output, shape index: {}]  }
   0x1   :  { %13 = vsyncpa [#allocation6], 0 }
   0x2   :  { %14 = vsyncpa [#allocation4], 0  ;;  %s3100_s24 = smov [#allocation2]   ;;  %s3028_s28 = scalar_lea.hbm %s3512_s3, 16384 }
   0x3   :  { %s26_s25 = sshll.u32 %s3100_s24, 4  ;;  %p3029_p0 = scmp.ne.s32.totalorder %s3512_s3, %s3028_s28  ;;  %s27_s25 = int_to_ptr.vmem [resolvable:$true] %s26_s25 }
   0x4   :  { %p3032_p1 = scmp.lt.u32.totalorder %s3028_s28, %s3512_s3 }
   0x6   :  { %p3034_p2 = pnand %p3032_p1, %p3029_p0 }
   0x8   :  { %3037 = shalt.err (!%p3034_p2)
}
   0x9   :  { %s3038_s10 = scalar_lea.vmem %s27_s25, 16384  ;;  %p3043_p4 = scmp.lt.s32.totalorder %s27_s25, %s27_s25 }
   0xa   :  { %p3039_p3 = scmp.ne.s32.totalorder %s27_s25, %s3038_s10  ;;  %p3044_p5 = scmp.lt.s32.totalorder %s3038_s10, %s3038_s10 }
   0xc   :  { %p3045_p6 = por %p3044_p5, %p3043_p4 }
   0xe   :  { %p3046_p7 = pnand %p3045_p6, %p3039_p3 }
  0x10   :  { %3049 = shalt.err (!%p3046_p7)
}
  0x11   :  { %s3101_s11 = smov 256   ;;  %s3102_s12 = smov 16  }
  0x12   :  { %32 = dma.hbm_to_vmem [thread:$0]  %s3512_s3, 16384, %s27_s25, [#allocation3], %s3101_s11, %s3101_s11, %s3102_s12  }
  0x13   :  { %s3103_s15 = smov [#allocation5]   ;;  %s3050_s19 = scalar_lea.hbm %s3514_s5, 4096 }
  0x14   :  { %s40_s16 = sshll.u32 %s3103_s15, 4  ;;  %p3051_p8 = scmp.ne.s32.totalorder %s3514_s5, %s3050_s19  ;;  %s41_s16 = int_to_ptr.vmem [resolvable:$true] %s40_s16 }
  0x15   :  { %p3054_p9 = scmp.lt.u32.totalorder %s3050_s19, %s3514_s5 }
  0x17   :  { %p3056_p10 = pnand %p3054_p9, %p3051_p8 }
  0x19   :  { %3059 = shalt.err (!%p3056_p10)
}
  0x1a   :  { %s3060_s24 = scalar_lea.vmem %s41_s16, 4096  ;;  %p3065_p12 = scmp.lt.s32.totalorder %s41_s16, %s41_s16 }
  0x1b   :  { %p3061_p11 = scmp.ne.s32.totalorder %s41_s16, %s3060_s24  ;;  %p3066_p13 = scmp.lt.s32.totalorder %s3060_s24, %s3060_s24 }
  0x1d   :  { %p3067_p0 = por %p3066_p13, %p3065_p12 }
  0x1f   :  { %p3068_p1 = pnand %p3067_p0, %p3061_p11 }
  0x21   :  { %3071 = shalt.err (!%p3068_p1)
}
  0x22   :  { %s3104_s3 = smov 64   ;;  %s3105_s25 = smov 4  }
  0x23   :  { %46 = dma.hbm_to_vmem [thread:$0]  %s3514_s5, 4096, %s41_s16, [#allocation6], %s3104_s3, %s3104_s3, %s3105_s25  }
  0x24   :  { %3094 = dma.done.wait [#allocation3], 16384  }
  0x25   :  { %3095 = vsyncadd [#allocation3], 4294950912 }
  0x26   :  { %3096 = dma.done.wait [#allocation6], 4096  }
  0x27   :  { %3097 = vsyncadd [#allocation6], 4294963200  ;;  %v3106_v0 = vmov 0   ;;  %v72_v1 = vld [vmem:[%s3510_s1] sm:$0xff]  ;;  %vm171_vm0 = vcmask 1043456   ;;  %vm146_vm1 = vcmask 64512  }
  0x28   :  { %216 = vmatprep.mubr.bf16.mxu0 %v3106_v0  ;;  %329 = vmatprep.mubr.bf16.mxu1 %v3106_v0  ;;  %v2344_v2 = vcombine.high %v72_v1, %v72_v1  ;;  %v2343_v3 = vcombine.low %v72_v1, %v72_v1  ;;  %v2794_v5 = vld [vmem:[%s3509_s0] sm:$0xff]   ;;  %v73_v6 = vld [vmem:[%s3510_s1 + $0x8] sm:$0xff]  ;;  %v2796_v23 = vld [vmem:[%s3509_s0 + $0x10] sm:$0xff]  }
  0x29   :  { %v2346_v7 = vcombine.high %v73_v6, %v73_v6  ;;  %v2345_v8 = vcombine.low %v73_v6, %v73_v6  ;;  %v2804_v9 = vld [vmem:[#allocation2] ss:$16 sps:$4 sm:$0xff]   ;;  %v2806_v10 = vld [vmem:[#allocation2 + $0x4] ss:$16 sps:$4 sm:$0xff]   ;;  %v2795_v11 = vld [vmem:[%s3509_s0 + $0x8] sm:$0xff]  }
  0x2a   :  { %2347 = vmatprep.subr.msk.bf16.mxu0 %vm171_vm0, %v2344_v2  ;;  %v173_v4 = vsel %vm171_vm0, %v2343_v3, 0  ;;  %v2809_v13 = vld [vmem:[#allocation2 + $0xc] ss:$16 sps:$4 sm:$0xff]   ;;  %v2812_v14 = vld [vmem:[#allocation2 + $0x24] ss:$16 sps:$4 sm:$0xff]  }
  0x2b   :  { %185 = vmatpush1.bf16.msra.mxu0 %v173_v4  ;;  %2356 = vmatprep.subr.msk.bf16.mxu1 %vm171_vm0, %v2346_v7  ;;  %v179_v12 = vsel %vm171_vm0, %v2345_v8, 0  ;;  %v2807_v15 = vld [vmem:[#allocation2 + $0x8] ss:$16 sps:$4 sm:$0xff]   ;;  %v2810_v16 = vld [vmem:[#allocation2 + $0x20] ss:$16 sps:$4 sm:$0xff]  }
  0x2c   :  { %1296 = vmatprep.subr.bf16.mxu0 %v2806_v10  ;;  %298 = vmatpush1.bf16.msra.mxu1 %v179_v12  ;;  %v2815_v17 = vld [vmem:[#allocation2 + $0x2c] ss:$16 sps:$4 sm:$0xff]   ;;  %v2818_v18 = vld [vmem:[#allocation2 + $0x44] ss:$16 sps:$4 sm:$0xff]   ;;  %v2813_v19 = vld [vmem:[#allocation2 + $0x28] ss:$16 sps:$4 sm:$0xff]  }
  0x2d   :  { %1522 = vmatprep.subr.bf16.mxu1 %v2809_v13  ;;  %v2816_v20 = vld [vmem:[#allocation2 + $0x40] ss:$16 sps:$4 sm:$0xff]   ;;  %v2821_v21 = vld [vmem:[#allocation2 + $0x4c] ss:$16 sps:$4 sm:$0xff]   ;;  %v2824_v22 = vld [vmem:[#allocation2 + $0x64] ss:$16 sps:$4 sm:$0xff]  }
  0x2e   :  { %2348 = vmatmul.mubr.msk.bf16.vlgmr.msra.gmra.mrb[0].mxu0 %vm146_vm1, %v2794_v5  ;;  %v2819_v24 = vld [vmem:[#allocation2 + $0x48] ss:$16 sps:$4 sm:$0xff]   ;;  %v2822_v25 = vld [vmem:[#allocation2 + $0x60] ss:$16 sps:$4 sm:$0xff]   ;;  %v2827_v26 = vld [vmem:[#allocation2 + $0x6c] ss:$16 sps:$4 sm:$0xff]  }
  0x2f   :  { %226 = vmatprep.mubr.bf16.mxu0 %v3106_v0  ;;  %1297 = vmatpush1.bf16.msra.mxu0 %v2804_v9  ;;  %v2830_v27 = vld [vmem:[#allocation2 + $0x84] ss:$16 sps:$4 sm:$0xff]   ;;  %v2825_v28 = vld [vmem:[#allocation2 + $0x68] ss:$16 sps:$4 sm:$0xff]   ;;  %v2828_v29 = vld [vmem:[#allocation2 + $0x80] ss:$16 sps:$4 sm:$0xff]  }
  0x30   :  { %1298 = vmatprep.subr.bf16.mxu0 %v2812_v14  ;;  %2357 = vmatmul.mubr.msk.bf16.vlgmr.msra.gmra.mrb[0].mxu1 %vm146_vm1, %v2794_v5  ;;  %v2833_v30 = vld [vmem:[#allocation2 + $0x8c] ss:$16 sps:$4 sm:$0xff]   ;;  %v2836_v31 = vld [vmem:[#allocation2 + $0xa4] ss:$16 sps:$4 sm:$0xff]   ;;  %v2831_v33 = vld [vmem:[#allocation2 + $0x88] ss:$16 sps:$4 sm:$0xff]  }
  0x31   :  { %339 = vmatprep.mubr.bf16.mxu1 %v3106_v0  ;;  %1523 = vmatpush1.bf16.msra.mxu1 %v2807_v15  ;;  %v2797_v32 = vld [vmem:[%s3509_s0 + $0x18] sm:$0xff]   ;;  %v2834_v34 = vld [vmem:[#allocation2 + $0xa0] ss:$16 sps:$4 sm:$0xff]   ;;  %v2842_v36 = vld [vmem:[#allocation2 + $0xc4] ss:$16 sps:$4 sm:$0xff]  }
  0x32   :  { %1524 = vmatprep.subr.bf16.mxu1 %v2815_v17  ;;  %v2839_v35 = vld [vmem:[#allocation2 + $0xac] ss:$16 sps:$4 sm:$0xff]   ;;  %v2837_v37 = vld [vmem:[#allocation2 + $0xa8] ss:$16 sps:$4 sm:$0xff]   ;;  %v2840_v38 = vld [vmem:[#allocation2 + $0xc0] ss:$16 sps:$4 sm:$0xff]  }
  0x33   :  { %1299 = vmatpush1.bf16.msra.mxu0 %v2810_v16  ;;  %v2845_v39 = vld [vmem:[#allocation2 + $0xcc] ss:$16 sps:$4 sm:$0xff]   ;;  %v2848_v40 = vld [vmem:[#allocation2 + $0xe4] ss:$16 sps:$4 sm:$0xff]   ;;  %v2843_v42 = vld [vmem:[#allocation2 + $0xc8] ss:$16 sps:$4 sm:$0xff]  }
  0x34   :  { %1300 = vmatprep.subr.bf16.mxu0 %v2818_v18  ;;  %v2798_v41 = vld [vmem:[%s3509_s0 + $0x20] sm:$0xff]   ;;  %v2851_v44 = vld [vmem:[#allocation2 + $0xec] ss:$16 sps:$4 sm:$0xff]   ;;  %v2849_v46 = vld [vmem:[#allocation2 + $0xe8] ss:$16 sps:$4 sm:$0xff]  }
  0x35   :  { %1525 = vmatpush1.bf16.msra.mxu1 %v2813_v19  ;;  %v2846_v43 = vld [vmem:[#allocation2 + $0xe0] ss:$16 sps:$4 sm:$0xff]   ;;  %v2854_v45 = vld [vmem:[#allocation2 + $0x104] ss:$16 sps:$4 sm:$0xff]   ;;  %v2857_v48 = vld [vmem:[#allocation2 + $0x10c] ss:$16 sps:$4 sm:$0xff]   ;;  %v76_v19 = vlaneseq }
  0x36   :  { %2349 = vmatmul.mubr.msk.bf16.gmra.mrb[4].mxu0 %vm146_vm1, %v2795_v11  ;;  %1526 = vmatprep.subr.bf16.mxu1 %v2821_v21  ;;  %v2852_v47 = vld [vmem:[#allocation2 + $0x100] ss:$16 sps:$4 sm:$0xff]   ;;  %v2860_v49 = vld [vmem:[#allocation2 + $0x124] ss:$16 sps:$4 sm:$0xff]   ;;  %v2799_v50 = vld [vmem:[%s3509_s0 + $0x28] sm:$0xff]  }
  0x37   :  { %236 = vmatprep.mubr.bf16.mxu0 %v3106_v0  ;;  %1301 = vmatpush1.bf16.msra.mxu0 %v2816_v20  ;;  %v2855_v51 = vld [vmem:[#allocation2 + $0x108] ss:$16 sps:$4 sm:$0xff]   ;;  %v2858_v52 = vld [vmem:[#allocation2 + $0x120] ss:$16 sps:$4 sm:$0xff]   ;;  %v2863_v53 = vld [vmem:[#allocation2 + $0x12c] ss:$16 sps:$4 sm:$0xff]  }
  0x38   :  { %1302 = vmatprep.subr.bf16.mxu0 %v2824_v22  ;;  %2358 = vmatmul.mubr.msk.bf16.gmra.mrb[4].mxu1 %vm146_vm1, %v2795_v11  ;;  %v2866_v54 = vld [vmem:[#allocation2 + $0x144] ss:$16 sps:$4 sm:$0xff]   ;;  %v2861_v55 = vld [vmem:[#allocation2 + $0x128] ss:$16 sps:$4 sm:$0xff]   ;;  %v2864_v56 = vld [vmem:[#allocation2 + $0x140] ss:$16 sps:$4 sm:$0xff]  }
  0x39   :  { %349 = vmatprep.mubr.bf16.mxu1 %v3106_v0  ;;  %1527 = vmatpush1.bf16.msra.mxu1 %v2819_v24  ;;  %v2869_v57 = vld [vmem:[#allocation2 + $0x14c] ss:$16 sps:$4 sm:$0xff]   ;;  %v2872_v58 = vld [vmem:[#allocation2 + $0x164] ss:$16 sps:$4 sm:$0xff]   ;;  %v2867_v60 = vld [vmem:[#allocation2 + $0x148] ss:$16 sps:$4 sm:$0xff]  }
  0x3a   :  { %1528 = vmatprep.subr.bf16.mxu1 %v2827_v26  ;;  %v2800_v59 = vld [vmem:[%s3509_s0 + $0x30] sm:$0xff]   ;;  %v2875_v62 = vld [vmem:[#allocation2 + $0x16c] ss:$16 sps:$4 sm:$0xff]   ;;  %v2873_v1 = vld [vmem:[#allocation2 + $0x168] ss:$16 sps:$4 sm:$0xff]   ;;  %v3240_v20 = vshrl.u32 %v76_v19, 7 }
  0x3b   :  { %1303 = vmatpush1.bf16.msra.mxu0 %v2822_v25  ;;  %v2870_v61 = vld [vmem:[#allocation2 + $0x160] ss:$16 sps:$4 sm:$0xff]   ;;  %v2878_v63 = vld [vmem:[#allocation2 + $0x184] ss:$16 sps:$4 sm:$0xff]   ;;  %v2881_v3 = vld [vmem:[#allocation2 + $0x18c] ss:$16 sps:$4 sm:$0xff]  }
  0x3c   :  { %1304 = vmatprep.subr.bf16.mxu0 %v2830_v27  ;;  %v2876_v2 = vld [vmem:[#allocation2 + $0x180] ss:$16 sps:$4 sm:$0xff]   ;;  %v2884_v4 = vld [vmem:[#allocation2 + $0x1a4] ss:$16 sps:$4 sm:$0xff]   ;;  %v2801_v5 = vld [vmem:[%s3509_s0 + $0x38] sm:$0xff]   ;;  %v78_v21 = vsub.s32 0, %v3240_v20 }
  0x3d   :  { %1529 = vmatpush1.bf16.msra.mxu1 %v2825_v28  ;;  %v2879_v6 = vld [vmem:[#allocation2 + $0x188] ss:$16 sps:$4 sm:$0xff]   ;;  %v2882_v7 = vld [vmem:[#allocation2 + $0x1a0] ss:$16 sps:$4 sm:$0xff]   ;;  %v2887_v8 = vld [vmem:[#allocation2 + $0x1ac] ss:$16 sps:$4 sm:$0xff]  }
  0x3e   :  { %2350 = vmatmul.mubr.msk.bf16.gmra.mrb[8].mxu0 %vm146_vm1, %v2796_v23  ;;  %1530 = vmatprep.subr.bf16.mxu1 %v2833_v30  ;;  %v2885_v9 = vld [vmem:[#allocation2 + $0x1a8] ss:$16 sps:$4 sm:$0xff]   ;;  %v2890_v10 = vld [vmem:[#allocation2 + $0x1c4] ss:$16 sps:$4 sm:$0xff]   ;;  %v2893_v11 = vld [vmem:[#allocation2 + $0x1cc] ss:$16 sps:$4 sm:$0xff]  }
  0x3f   :  { %246 = vmatprep.mubr.bf16.mxu0 %v3106_v0  ;;  %1305 = vmatpush1.bf16.msra.mxu0 %v2828_v29  ;;  %v2888_v12 = vld [vmem:[#allocation2 + $0x1c0] ss:$16 sps:$4 sm:$0xff]   ;;  %v2891_v13 = vld [vmem:[#allocation2 + $0x1c8] ss:$16 sps:$4 sm:$0xff]   ;;  %v2896_v14 = vld [vmem:[#allocation2 + $0x1e4] ss:$16 sps:$4 sm:$0xff]  }
  0x40   :  { %1306 = vmatprep.subr.bf16.mxu0 %v2836_v31  ;;  %2359 = vmatmul.mubr.msk.bf16.gmra.mrb[8].mxu1 %vm146_vm1, %v2796_v23  ;;  %v2899_v15 = vld [vmem:[#allocation2 + $0x1ec] ss:$16 sps:$4 sm:$0xff]   ;;  %v2894_v16 = vld [vmem:[#allocation2 + $0x1e0] ss:$16 sps:$4 sm:$0xff]   ;;  %v2897_v17 = vld [vmem:[#allocation2 + $0x1e8] ss:$16 sps:$4 sm:$0xff]  }
  0x41   :  { %359 = vmatprep.mubr.bf16.mxu1 %v3106_v0  ;;  %1531 = vmatpush1.bf16.msra.mxu1 %v2831_v33  ;;  %v2905_v18 = vld [vmem:[#allocation2 + $0x20c] ss:$16 sps:$4 sm:$0xff]   ;;  %v74_v22 = vld [vmem:[%s3511_s2] sm:$0xf]  ;;  %v82_v23 = vsub.s32 1, %v3240_v20  ;;  %v86_v29 = vsub.s32 2, %v3240_v20 }
  0x42   :  { %1532 = vmatprep.subr.bf16.mxu1 %v2839_v35  ;;  %v3249_v24 = vrot.slane %v74_v22, %v78_v21 }
  0x43   :  { %1307 = vmatpush1.bf16.msra.mxu0 %v2834_v34  ;;  %v3253_v25 = vrot.slane %v74_v22, %v82_v23 }
  0x44   :  { %1308 = vmatprep.subr.bf16.mxu0 %v2842_v36 }
  0x45   :  { %1533 = vmatpush1.bf16.msra.mxu1 %v2837_v37 }
  0x46   :  { %2351 = vmatmul.mubr.msk.bf16.gmra.mrb[12].mxu0 %vm146_vm1, %v2797_v32  ;;  %1534 = vmatprep.subr.bf16.mxu1 %v2845_v39 }
  0x47   :  { %256 = vmatprep.mubr.bf16.mxu0 %v3106_v0  ;;  %1309 = vmatpush1.bf16.msra.mxu0 %v2840_v38  ;;  %v3263_v38 = vrot.slane %v74_v22, %v86_v29 }
  0x48   :  { %1310 = vmatprep.subr.bf16.mxu0 %v2848_v40  ;;  %2360 = vmatmul.mubr.msk.bf16.gmra.mrb[12].mxu1 %vm146_vm1, %v2797_v32  ;;  %v90_v32 = vsub.s32 3, %v3240_v20 }
  0x49   :  { %369 = vmatprep.mubr.bf16.mxu1 %v3106_v0  ;;  %1535 = vmatpush1.bf16.msra.mxu1 %v2843_v42 }
  0x4a   :  { %1536 = vmatprep.subr.bf16.mxu1 %v2851_v44 }
  0x4b   :  { %1311 = vmatpush1.bf16.msra.mxu0 %v2846_v43 }
  0x4c   :  { %1312 = vmatprep.subr.bf16.mxu0 %v2854_v45  ;;  %v2900_v45 = vld [vmem:[#allocation2 + $0x200] ss:$16 sps:$4 sm:$0xff]  }
  0x4d   :  { %1537 = vmatpush1.bf16.msra.mxu1 %v2849_v46  ;;  %v2903_v46 = vld [vmem:[#allocation2 + $0x208] ss:$16 sps:$4 sm:$0xff]  }
  0x4e   :  { %2352 = vmatmul.mubr.msk.bf16.gmra.mrb[16].mxu0 %vm146_vm1, %v2798_v41  ;;  %1538 = vmatprep.subr.bf16.mxu1 %v2857_v48 }
  0x4f   :  { %266 = vmatprep.mubr.bf16.mxu0 %v3106_v0  ;;  %1313 = vmatpush1.bf16.msra.mxu0 %v2852_v47 }
  0x50   :  { %1314 = vmatprep.subr.bf16.mxu0 %v2860_v49  ;;  %2361 = vmatmul.mubr.msk.bf16.gmra.mrb[16].mxu1 %vm146_vm1, %v2798_v41  ;;  %v3267_v41 = vrot.slane %v74_v22, %v90_v32 }
  0x51   :  { %379 = vmatprep.mubr.bf16.mxu1 %v3106_v0  ;;  %1539 = vmatpush1.bf16.msra.mxu1 %v2855_v51  ;;  %v2911_v51 = vld [vmem:[#allocation2 + $0x22c] ss:$16 sps:$4 sm:$0xff]  }
  0x52   :  { %1540 = vmatprep.subr.bf16.mxu1 %v2863_v53 }
  0x53   :  { %1315 = vmatpush1.bf16.msra.mxu0 %v2858_v52 }
  0x54   :  { %1316 = vmatprep.subr.bf16.mxu0 %v2866_v54 }
  0x55   :  { %1541 = vmatpush1.bf16.msra.mxu1 %v2861_v55 }
  0x56   :  { %2353 = vmatmul.mubr.msk.bf16.gmra.mrb[20].mxu0 %vm146_vm1, %v2799_v50  ;;  %1542 = vmatprep.subr.bf16.mxu1 %v2869_v57 }
  0x57   :  { %276 = vmatprep.mubr.bf16.mxu0 %v3106_v0  ;;  %1317 = vmatpush1.bf16.msra.mxu0 %v2864_v56 }
  0x58   :  { %1318 = vmatprep.subr.bf16.mxu0 %v2872_v58  ;;  %2362 = vmatmul.mubr.msk.bf16.gmra.mrb[20].mxu1 %vm146_vm1, %v2799_v50  ;;  %v2908_v50 = vld [vmem:[#allocation2 + $0x224] ss:$16 sps:$4 sm:$0xff]  }
  0x59   :  { %389 = vmatprep.mubr.bf16.mxu1 %v3106_v0  ;;  %1543 = vmatpush1.bf16.msra.mxu1 %v2867_v60  ;;  %v2906_v60 = vld [vmem:[#allocation2 + $0x220] ss:$16 sps:$4 sm:$0xff]  }
  0x5a   :  { %1544 = vmatprep.subr.bf16.mxu1 %v2875_v62 }
  0x5b   :  { %1319 = vmatpush1.bf16.msra.mxu0 %v2870_v61 }
  0x5c   :  { %1320 = vmatprep.subr.bf16.mxu0 %v2878_v63 }
  0x5d   :  { %1545 = vmatpush1.bf16.msra.mxu1 %v2873_v1 }
  0x5e   :  { %2354 = vmatmul.mubr.msk.bf16.gmra.mrb[24].mxu0 %vm146_vm1, %v2800_v59  ;;  %1546 = vmatprep.subr.bf16.mxu1 %v2881_v3  ;;  %v2914_v3 = vld [vmem:[#allocation2 + $0x244] ss:$16 sps:$4 sm:$0xff]  }
  0x5f   :  { %286 = vmatprep.mubr.bf16.mxu0 %v3106_v0  ;;  %1321 = vmatpush1.bf16.msra.mxu0 %v2876_v2  ;;  %v2909_v2 = vld [vmem:[#allocation2 + $0x228] ss:$16 sps:$4 sm:$0xff]  }
  0x60   :  { %1322 = vmatprep.subr.bf16.mxu0 %v2884_v4  ;;  %2363 = vmatmul.mubr.msk.bf16.gmra.mrb[24].mxu1 %vm146_vm1, %v2800_v59 }
  0x61   :  { %399 = vmatprep.mubr.bf16.mxu1 %v3106_v0  ;;  %1547 = vmatpush1.bf16.msra.mxu1 %v2879_v6  ;;  %v2902_v0 = vld [vmem:[#allocation2 + $0x204] ss:$16 sps:$4 sm:$0xff]  }
  0x62   :  { %1548 = vmatprep.subr.bf16.mxu1 %v2887_v8  ;;  %v2917_v8 = vld [vmem:[#allocation2 + $0x24c] ss:$16 sps:$4 sm:$0xff]  }
  0x63   :  { %1323 = vmatpush1.bf16.msra.mxu0 %v2882_v7 }
  0x64   :  { %1324 = vmatprep.subr.bf16.mxu0 %v2890_v10 }
  0x65   :  { %1549 = vmatpush1.bf16.msra.mxu1 %v2885_v9 }
  0x66   :  { %2355 = vmatmul.mubr.msk.bf16.gmra.mrb[28].mxu0 %vm146_vm1, %v2801_v5  ;;  %1550 = vmatprep.subr.bf16.mxu1 %v2893_v11 }
  0x67   :  { %1325 = vmatpush1.bf16.msra.mxu0 %v2888_v12 }
  0x68   :  { %2364 = vmatmul.mubr.msk.bf16.gmra.mrb[28].mxu1 %vm146_vm1, %v2801_v5  ;;  %1326 = vmatprep.subr.bf16.mxu0 %v2896_v14 }
  0x69   :  { %1551 = vmatpush1.bf16.msra.mxu1 %v2891_v13 }
  0x6a   :  { %1552 = vmatprep.subr.bf16.mxu1 %v2899_v15 }
  0x6b   :  { %1327 = vmatpush1.bf16.msra.mxu0 %v2894_v16 }
  0x6c   :  { %1409 = vmatprep.subr.bf16.mxu0 %v2902_v0  ;;  %v2915_v0 = vld [vmem:[#allocation2 + $0x248] ss:$16 sps:$4 sm:$0xff]  }
  0x6d   :  { %1553 = vmatpush1.bf16.msra.mxu1 %v2897_v17  ;;  %v2912_v17 = vld [vmem:[#allocation2 + $0x240] ss:$16 sps:$4 sm:$0xff]  }
  0x6e   :  { %1635 = vmatprep.subr.bf16.mxu1 %v2905_v18 }
 0x101   :  { %v218_v26 = vpop.f32.mrb[0].mxu0 }
 0x102   :  { %v219_v27 = vadd.f32 %v218_v26, %v3249_v24  ;;  %v220_v28 = vpop.f32.mrb[1].mxu0 }
 0x103   :  { %v221_v30 = vadd.f32 %v220_v28, %v3253_v25  ;;  %v222_v31 = vpop.f32.mrb[2].mxu0  ;;  %v331_v47 = vpop.f32.mrb[0].mxu1  ;;  %v2923_v28 = vld [vmem:[#allocation2 + $0x26c] ss:$16 sps:$4 sm:$0xff]  }
 0x104   :  { %v223_v33 = vadd.f32 %v222_v31, %v3249_v24  ;;  %v224_v34 = vpop.f32.mrb[3].mxu0  ;;  %v410_v36 = vmax.f32 %v219_v27, 0.0  ;;  %v332_v52 = vadd.f32 %v331_v47, %v3263_v38  ;;  %v333_v53 = vpop.f32.mrb[1].mxu1  ;;  %v2920_v27 = vld [vmem:[#allocation2 + $0x264] ss:$16 sps:$4 sm:$0xff]  }
 0x105   :  { %v225_v35 = vadd.f32 %v224_v34, %v3253_v25  ;;  %v411_v39 = vmax.f32 %v221_v30, 0.0  ;;  %v334_v56 = vadd.f32 %v333_v53, %v3267_v41  ;;  %v335_v57 = vpop.f32.mrb[2].mxu1  ;;  %v2926_v47 = vld [vmem:[#allocation2 + $0x284] ss:$16 sps:$4 sm:$0xff]  }
 0x106   :  { %v414_v37 = vmax.f32 %v223_v33, 0.0  ;;  %v412_v61 = vmax.f32 %v332_v52, 0.0  ;;  %v336_v62 = vadd.f32 %v335_v57, %v3263_v38  ;;  %v337_v63 = vpop.f32.mrb[3].mxu1  ;;  %v2929_v52 = vld [vmem:[#allocation2 + $0x28c] ss:$16 sps:$4 sm:$0xff]  }
 0x107   :  { %v415_v40 = vmax.f32 %v225_v35, 0.0  ;;  %v413_v4 = vmax.f32 %v334_v56, 0.0  ;;  %v338_v5 = vadd.f32 %v337_v63, %v3267_v41 }
 0x108   :  { %v474_v42 = vpack.c.bf16 %v414_v37, %v410_v36  ;;  %v416_v9 = vmax.f32 %v336_v62, 0.0  ;;  %v2927_v62 = vld [vmem:[#allocation2 + $0x288] ss:$16 sps:$4 sm:$0xff]  }
 0x109   :  { %v475_v43 = vpack.c.bf16 %v415_v40, %v411_v39  ;;  %v228_v44 = vpop.f32.mrb[4].mxu0  ;;  %v417_v12 = vmax.f32 %v338_v5, 0.0  ;;  %v2918_v40 = vld [vmem:[#allocation2 + $0x260] ss:$16 sps:$4 sm:$0xff]   ;;  %v2935_v5 = vld [vmem:[#allocation2 + $0x2ac] ss:$16 sps:$4 sm:$0xff]  }
 0x10a   :  { %v229_v48 = vadd.f32 %v228_v44, %v3249_v24  ;;  %v230_v49 = vpop.f32.mrb[5].mxu0  ;;  %v3277_v14 = vpack.c.bf16 %v416_v9, %v412_v61  ;;  %v2924_v61 = vld [vmem:[#allocation2 + $0x280] ss:$16 sps:$4 sm:$0xff]  }
 0x10b   :  { %v231_v54 = vadd.f32 %v230_v49, %v3253_v25  ;;  %v232_v55 = vpop.f32.mrb[6].mxu0  ;;  %1328 = vmatprep.mubr.bf16.mxu0 %v475_v43  ;;  %1554 = vmatprep.mubr.bf16.mxu1 %v475_v43  ;;  %v3279_v18 = vpack.c.bf16 %v417_v12, %v413_v4  ;;  %v341_v19 = vpop.f32.mrb[4].mxu1  ;;  %v2932_v4 = vld [vmem:[#allocation2 + $0x2a4] ss:$16 sps:$4 sm:$0xff]  }
 0x10c   :  { %v233_v58 = vadd.f32 %v232_v55, %v3249_v24  ;;  %v234_v59 = vpop.f32.mrb[7].mxu0  ;;  %1329 = vmatmul.mubr.bf16.vlgmr.msra.gmra.mrb[32].mxu0 %v474_v42  ;;  %1555 = vmatmul.mubr.bf16.vlgmr.msra.gmra.mrb[32].mxu1 %v474_v42  ;;  %v418_v6 = vmax.f32 %v229_v48, 0.0  ;;  %v342_v30 = vadd.f32 %v341_v19, %v3263_v38  ;;  %v343_v31 = vpop.f32.mrb[5].mxu1 }
 0x10d   :  { %v235_v1 = vadd.f32 %v234_v59, %v3253_v25  ;;  %1410 = vmatpush1.bf16.msra.mxu0 %v2900_v45  ;;  %1636 = vmatpush1.bf16.msra.mxu1 %v2903_v46  ;;  %v419_v10 = vmax.f32 %v231_v54, 0.0  ;;  %v344_v35 = vadd.f32 %v343_v31, %v3267_v41  ;;  %v345_v36 = vpop.f32.mrb[6].mxu1  ;;  %v2921_v46 = vld [vmem:[#allocation2 + $0x268] ss:$16 sps:$4 sm:$0xff]  }
 0x10e   :  { %v422_v7 = vmax.f32 %v233_v58, 0.0  ;;  %1411 = vmatprep.subr.bf16.mxu0 %v2908_v50  ;;  %1637 = vmatprep.subr.bf16.mxu1 %v2911_v51  ;;  %v420_v42 = vmax.f32 %v342_v30, 0.0  ;;  %v346_v43 = vadd.f32 %v345_v36, %v3263_v38  ;;  %v347_v44 = vpop.f32.mrb[7].mxu1 }
 0x10f   :  { %v423_v11 = vmax.f32 %v235_v1, 0.0  ;;  %v421_v48 = vmax.f32 %v344_v35, 0.0  ;;  %v348_v49 = vadd.f32 %v347_v44, %v3267_v41  ;;  %v2936_v44 = vld [vmem:[#allocation2 + $0x2c0] ss:$16 sps:$4 sm:$0xff]  }
 0x110   :  { %v478_v13 = vpack.c.bf16 %v422_v7, %v418_v6  ;;  %v424_v53 = vmax.f32 %v346_v43, 0.0 }
 0x111   :  { %v479_v15 = vpack.c.bf16 %v423_v11, %v419_v10  ;;  %1412 = vmatpush1.bf16.msra.mxu0 %v2906_v60  ;;  %v238_v16 = vpop.f32.mrb[8].mxu0  ;;  %1638 = vmatpush1.bf16.msra.mxu1 %v2909_v2  ;;  %v425_v56 = vmax.f32 %v348_v49, 0.0 }
 0x112   :  { %v239_v22 = vadd.f32 %v238_v16, %v3249_v24  ;;  %v240_v26 = vpop.f32.mrb[9].mxu0  ;;  %1413 = vmatprep.subr.bf16.mxu0 %v2914_v3  ;;  %1639 = vmatprep.subr.bf16.mxu1 %v2917_v8  ;;  %v3289_v58 = vpack.c.bf16 %v424_v53, %v420_v42 }
 0x113   :  { %v241_v33 = vadd.f32 %v240_v26, %v3253_v25  ;;  %v242_v34 = vpop.f32.mrb[10].mxu0  ;;  %1338 = vmatprep.mubr.bf16.mxu0 %v479_v15  ;;  %1564 = vmatprep.mubr.bf16.mxu1 %v479_v15  ;;  %v3291_v63 = vpack.c.bf16 %v425_v56, %v421_v48  ;;  %v351_v1 = vpop.f32.mrb[8].mxu1  ;;  %v2930_v15 = vld [vmem:[#allocation2 + $0x2a0] ss:$16 sps:$4 sm:$0xff]   ;;  %v2938_v26 = vld [vmem:[#allocation2 + $0x2c4] ss:$16 sps:$4 sm:$0xff]  }
 0x114   :  { %v243_v37 = vadd.f32 %v242_v34, %v3249_v24  ;;  %v244_v39 = vpop.f32.mrb[11].mxu0  ;;  %1339 = vmatmul.mubr.bf16.gmra.mrb[36].mxu0 %v478_v13  ;;  %1565 = vmatmul.mubr.bf16.gmra.mrb[36].mxu1 %v478_v13  ;;  %v426_v50 = vmax.f32 %v239_v22, 0.0  ;;  %v352_v6 = vadd.f32 %v351_v1, %v3263_v38  ;;  %v353_v7 = vpop.f32.mrb[9].mxu1  ;;  %v2933_v22 = vld [vmem:[#allocation2 + $0x2a8] ss:$16 sps:$4 sm:$0xff]  }
 0x115   :  { %v245_v45 = vadd.f32 %v244_v39, %v3253_v25  ;;  %1414 = vmatpush1.bf16.msra.mxu0 %v2912_v17  ;;  %1640 = vmatpush1.bf16.msra.mxu1 %v2915_v0  ;;  %v427_v54 = vmax.f32 %v241_v33, 0.0  ;;  %v354_v10 = vadd.f32 %v353_v7, %v3267_v41  ;;  %v355_v11 = vpop.f32.mrb[10].mxu1  ;;  %v2941_v33 = vld [vmem:[#allocation2 + $0x2cc] ss:$16 sps:$4 sm:$0xff]  }
 0x116   :  { %v430_v51 = vmax.f32 %v243_v37, 0.0  ;;  %1415 = vmatprep.subr.bf16.mxu0 %v2920_v27  ;;  %1641 = vmatprep.subr.bf16.mxu1 %v2923_v28  ;;  %v428_v16 = vmax.f32 %v352_v6, 0.0  ;;  %v356_v17 = vadd.f32 %v355_v11, %v3263_v38  ;;  %v357_v0 = vpop.f32.mrb[11].mxu1 }
 0x117   :  { %v431_v55 = vmax.f32 %v245_v45, 0.0  ;;  %v429_v27 = vmax.f32 %v354_v10, 0.0  ;;  %v358_v28 = vadd.f32 %v357_v0, %v3267_v41  ;;  %v2939_v45 = vld [vmem:[#allocation2 + $0x2c8] ss:$16 sps:$4 sm:$0xff]   ;;  %v2953_v10 = vld [vmem:[#allocation2 + $0x30c] ss:$16 sps:$4 sm:$0xff]  }
 0x118   :  { %v482_v57 = vpack.c.bf16 %v430_v51, %v426_v50  ;;  %v432_v34 = vmax.f32 %v356_v17, 0.0  ;;  %v2944_v50 = vld [vmem:[#allocation2 + $0x2e4] ss:$16 sps:$4 sm:$0xff]   ;;  %v2947_v51 = vld [vmem:[#allocation2 + $0x2ec] ss:$16 sps:$4 sm:$0xff]  }
 0x119   :  { %v483_v59 = vpack.c.bf16 %v431_v55, %v427_v54  ;;  %1416 = vmatpush1.bf16.msra.mxu0 %v2918_v40  ;;  %v248_v60 = vpop.f32.mrb[12].mxu0  ;;  %1642 = vmatpush1.bf16.msra.mxu1 %v2921_v46  ;;  %v433_v37 = vmax.f32 %v358_v28, 0.0 }
 0x11a   :  { %v249_v2 = vadd.f32 %v248_v60, %v3249_v24  ;;  %v250_v3 = vpop.f32.mrb[13].mxu0  ;;  %1417 = vmatprep.subr.bf16.mxu0 %v2926_v47  ;;  %1643 = vmatprep.subr.bf16.mxu1 %v2929_v52  ;;  %v3301_v40 = vpack.c.bf16 %v432_v34, %v428_v16  ;;  %v2959_v34 = vld [vmem:[#allocation2 + $0x32c] ss:$16 sps:$4 sm:$0xff]  }
 0x11b   :  { %v251_v8 = vadd.f32 %v250_v3, %v3253_v25  ;;  %v252_v9 = vpop.f32.mrb[14].mxu0  ;;  %1348 = vmatprep.mubr.bf16.mxu0 %v483_v59  ;;  %1574 = vmatprep.mubr.bf16.mxu1 %v483_v59  ;;  %v3303_v46 = vpack.c.bf16 %v433_v37, %v429_v27  ;;  %v361_v47 = vpop.f32.mrb[12].mxu1 }
 0x11c   :  { %v253_v12 = vadd.f32 %v252_v9, %v3249_v24  ;;  %v254_v13 = vpop.f32.mrb[15].mxu0  ;;  %1349 = vmatmul.mubr.bf16.gmra.mrb[40].mxu0 %v482_v57  ;;  %1575 = vmatmul.mubr.bf16.gmra.mrb[40].mxu1 %v482_v57  ;;  %v434_v30 = vmax.f32 %v249_v2, 0.0  ;;  %v362_v52 = vadd.f32 %v361_v47, %v3263_v38  ;;  %v363_v53 = vpop.f32.mrb[13].mxu1  ;;  %v2954_v47 = vld [vmem:[#allocation2 + $0x320] ss:$16 sps:$4 sm:$0xff]  }
 0x11d   :  { %v255_v19 = vadd.f32 %v254_v13, %v3253_v25  ;;  %1418 = vmatpush1.bf16.msra.mxu0 %v2924_v61  ;;  %1644 = vmatpush1.bf16.msra.mxu1 %v2927_v62  ;;  %v435_v35 = vmax.f32 %v251_v8, 0.0  ;;  %v364_v56 = vadd.f32 %v363_v53, %v3267_v41  ;;  %v365_v57 = vpop.f32.mrb[14].mxu1  ;;  %v2942_v61 = vld [vmem:[#allocation2 + $0x2e0] ss:$16 sps:$4 sm:$0xff]   ;;  %v2962_v53 = vld [vmem:[#allocation2 + $0x344] ss:$16 sps:$4 sm:$0xff]  }
 0x11e   :  { %v438_v31 = vmax.f32 %v253_v12, 0.0  ;;  %1419 = vmatprep.subr.bf16.mxu0 %v2932_v4  ;;  %1645 = vmatprep.subr.bf16.mxu1 %v2935_v5  ;;  %v436_v62 = vmax.f32 %v362_v52, 0.0  ;;  %v366_v1 = vadd.f32 %v365_v57, %v3263_v38  ;;  %v367_v2 = vpop.f32.mrb[15].mxu1  ;;  %v2945_v4 = vld [vmem:[#allocation2 + $0x2e8] ss:$16 sps:$4 sm:$0xff]  }
 0x11f   :  { %v439_v36 = vmax.f32 %v255_v19, 0.0  ;;  %v2950_v5 = vld [vmem:[#allocation2 + $0x304] ss:$16 sps:$4 sm:$0xff]   ;;  %v437_v6 = vmax.f32 %v364_v56, 0.0  ;;  %v368_v7 = vadd.f32 %v367_v2, %v3267_v41  ;;  %v2957_v52 = vld [vmem:[#allocation2 + $0x328] ss:$16 sps:$4 sm:$0xff]  }
 0x120   :  { %v486_v39 = vpack.c.bf16 %v438_v31, %v434_v30  ;;  %v440_v11 = vmax.f32 %v366_v1, 0.0 }
 0x121   :  { %v487_v42 = vpack.c.bf16 %v439_v36, %v435_v35  ;;  %1420 = vmatpush1.bf16.msra.mxu0 %v2930_v15  ;;  %v258_v43 = vpop.f32.mrb[16].mxu0  ;;  %1646 = vmatpush1.bf16.msra.mxu1 %v2933_v22  ;;  %v441_v15 = vmax.f32 %v368_v7, 0.0  ;;  %v2948_v22 = vld [vmem:[#allocation2 + $0x300] ss:$16 sps:$4 sm:$0xff]   ;;  %v2963_v7 = vld [vmem:[#allocation2 + $0x348] ss:$16 sps:$4 sm:$0xff]  }
 0x122   :  { %v259_v48 = vadd.f32 %v258_v43, %v3249_v24  ;;  %v260_v49 = vpop.f32.mrb[17].mxu0  ;;  %1421 = vmatprep.subr.bf16.mxu0 %v2938_v26  ;;  %1647 = vmatprep.subr.bf16.mxu1 %v2941_v33  ;;  %v3313_v17 = vpack.c.bf16 %v440_v11, %v436_v62  ;;  %v2951_v26 = vld [vmem:[#allocation2 + $0x308] ss:$16 sps:$4 sm:$0xff]   ;;  %v2956_v33 = vld [vmem:[#allocation2 + $0x324] ss:$16 sps:$4 sm:$0xff]  }
 0x123   :  { %v261_v54 = vadd.f32 %v260_v49, %v3253_v25  ;;  %v262_v55 = vpop.f32.mrb[18].mxu0  ;;  %1358 = vmatprep.mubr.bf16.mxu0 %v487_v42  ;;  %1584 = vmatprep.mubr.bf16.mxu1 %v487_v42  ;;  %v3315_v27 = vpack.c.bf16 %v441_v15, %v437_v6  ;;  %v371_v28 = vpop.f32.mrb[16].mxu1  ;;  %v2960_v6 = vld [vmem:[#allocation2 + $0x340] ss:$16 sps:$4 sm:$0xff]  }
 0x124   :  { %v263_v59 = vadd.f32 %v262_v55, %v3249_v24  ;;  %v264_v60 = vpop.f32.mrb[19].mxu0  ;;  %1359 = vmatmul.mubr.bf16.gmra.mrb[44].mxu0 %v486_v39  ;;  %1585 = vmatmul.mubr.bf16.gmra.mrb[44].mxu1 %v486_v39  ;;  %v442_v8 = vmax.f32 %v259_v48, 0.0  ;;  %v372_v35 = vadd.f32 %v371_v28, %v3263_v38  ;;  %v373_v36 = vpop.f32.mrb[17].mxu1 }
 0x125   :  { %v265_v3 = vadd.f32 %v264_v60, %v3253_v25  ;;  %1422 = vmatpush1.bf16.msra.mxu0 %v2936_v44  ;;  %1648 = vmatpush1.bf16.msra.mxu1 %v2939_v45  ;;  %v443_v12 = vmax.f32 %v261_v54, 0.0  ;;  %v374_v42 = vadd.f32 %v373_v36, %v3267_v41  ;;  %v375_v43 = vpop.f32.mrb[18].mxu1 }
 0x126   :  { %v446_v9 = vmax.f32 %v263_v59, 0.0  ;;  %1423 = vmatprep.subr.bf16.mxu0 %v2944_v50  ;;  %1649 = vmatprep.subr.bf16.mxu1 %v2947_v51  ;;  %v444_v48 = vmax.f32 %v372_v35, 0.0  ;;  %v376_v49 = vadd.f32 %v375_v43, %v3263_v38  ;;  %v377_v50 = vpop.f32.mrb[19].mxu1  ;;  %v2965_v59 = vld [vmem:[#allocation2 + $0x34c] ss:$16 sps:$4 sm:$0xff]  }
 0x127   :  { %v447_v13 = vmax.f32 %v265_v3, 0.0  ;;  %v445_v54 = vmax.f32 %v374_v42, 0.0  ;;  %v378_v55 = vadd.f32 %v377_v50, %v3267_v41 }
 0x128   :  { %v490_v16 = vpack.c.bf16 %v446_v9, %v442_v8  ;;  %v448_v60 = vmax.f32 %v376_v49, 0.0 }
 0x129   :  { %v491_v0 = vpack.c.bf16 %v447_v13, %v443_v12  ;;  %1424 = vmatpush1.bf16.msra.mxu0 %v2942_v61  ;;  %v268_v19 = vpop.f32.mrb[20].mxu0  ;;  %1650 = vmatpush1.bf16.msra.mxu1 %v2945_v4  ;;  %v449_v1 = vmax.f32 %v378_v55, 0.0  ;;  %v2968_v12 = vld [vmem:[#allocation2 + $0x364] ss:$16 sps:$4 sm:$0xff]   ;;  %v2971_v13 = vld [vmem:[#allocation2 + $0x36c] ss:$16 sps:$4 sm:$0xff]  }
 0x12a   :  { %v269_v30 = vadd.f32 %v268_v19, %v3249_v24  ;;  %v270_v31 = vpop.f32.mrb[21].mxu0  ;;  %1425 = vmatprep.subr.bf16.mxu0 %v2950_v5  ;;  %1651 = vmatprep.subr.bf16.mxu1 %v2953_v10  ;;  %v3325_v3 = vpack.c.bf16 %v448_v60, %v444_v48 }
 0x12b   :  { %v271_v37 = vadd.f32 %v270_v31, %v3253_v25  ;;  %v272_v39 = vpop.f32.mrb[22].mxu0  ;;  %1368 = vmatprep.mubr.bf16.mxu0 %v491_v0  ;;  %1594 = vmatprep.mubr.bf16.mxu1 %v491_v0  ;;  %v3327_v8 = vpack.c.bf16 %v449_v1, %v445_v54  ;;  %v381_v9 = vpop.f32.mrb[20].mxu1  ;;  %v2966_v31 = vld [vmem:[#allocation2 + $0x360] ss:$16 sps:$4 sm:$0xff]   ;;  %v2980_v1 = vld [vmem:[#allocation2 + $0x3a4] ss:$16 sps:$4 sm:$0xff]  }
 0x12c   :  { %v273_v44 = vadd.f32 %v272_v39, %v3249_v24  ;;  %v274_v45 = vpop.f32.mrb[23].mxu0  ;;  %1369 = vmatmul.mubr.bf16.gmra.mrb[48].mxu0 %v490_v16  ;;  %1595 = vmatmul.mubr.bf16.gmra.mrb[48].mxu1 %v490_v16  ;;  %v450_v56 = vmax.f32 %v269_v30, 0.0  ;;  %v382_v15 = vadd.f32 %v381_v9, %v3263_v38  ;;  %v383_v16 = vpop.f32.mrb[21].mxu1  ;;  %v2974_v39 = vld [vmem:[#allocation2 + $0x384] ss:$16 sps:$4 sm:$0xff]  }
 0x12d   :  { %v275_v51 = vadd.f32 %v274_v45, %v3253_v25  ;;  %1426 = vmatpush1.bf16.msra.mxu0 %v2948_v22  ;;  %1652 = vmatpush1.bf16.msra.mxu1 %v2951_v26  ;;  %v451_v61 = vmax.f32 %v271_v37, 0.0  ;;  %v384_v22 = vadd.f32 %v383_v16, %v3267_v41  ;;  %v385_v26 = vpop.f32.mrb[22].mxu1  ;;  %v2969_v37 = vld [vmem:[#allocation2 + $0x368] ss:$16 sps:$4 sm:$0xff]  }
 0x12e   :  { %v454_v57 = vmax.f32 %v273_v44, 0.0  ;;  %1427 = vmatprep.subr.bf16.mxu0 %v2956_v33  ;;  %1653 = vmatprep.subr.bf16.mxu1 %v2959_v34  ;;  %v452_v33 = vmax.f32 %v382_v15, 0.0  ;;  %v386_v34 = vadd.f32 %v385_v26, %v3263_v38  ;;  %v387_v35 = vpop.f32.mrb[23].mxu1  ;;  %v2986_v26 = vld [vmem:[#allocation2 + $0x3c4] ss:$16 sps:$4 sm:$0xff]  }
 0x12f   :  { %v455_v62 = vmax.f32 %v275_v51, 0.0  ;;  %v453_v42 = vmax.f32 %v384_v22, 0.0  ;;  %v388_v43 = vadd.f32 %v387_v35, %v3267_v41  ;;  %v2981_v22 = vld [vmem:[#allocation2 + $0x3a8] ss:$16 sps:$4 sm:$0xff]  }
 0x130   :  { %v494_v2 = vpack.c.bf16 %v454_v57, %v450_v56  ;;  %v456_v48 = vmax.f32 %v386_v34, 0.0  ;;  %v2972_v56 = vld [vmem:[#allocation2 + $0x380] ss:$16 sps:$4 sm:$0xff]   ;;  %v2975_v57 = vld [vmem:[#allocation2 + $0x388] ss:$16 sps:$4 sm:$0xff]  }
 0x131   :  { %v495_v4 = vpack.c.bf16 %v455_v62, %v451_v61  ;;  %1428 = vmatpush1.bf16.msra.mxu0 %v2954_v47  ;;  %v278_v5 = vpop.f32.mrb[24].mxu0  ;;  %1654 = vmatpush1.bf16.msra.mxu1 %v2957_v52  ;;  %v2977_v47 = vld [vmem:[#allocation2 + $0x38c] ss:$16 sps:$4 sm:$0xff]   ;;  %v457_v51 = vmax.f32 %v388_v43, 0.0  ;;  %v2984_v43 = vld [vmem:[#allocation2 + $0x3c0] ss:$16 sps:$4 sm:$0xff]  }
 0x132   :  { %v279_v10 = vadd.f32 %v278_v5, %v3249_v24  ;;  %v280_v11 = vpop.f32.mrb[25].mxu0  ;;  %1429 = vmatprep.subr.bf16.mxu0 %v2962_v53  ;;  %1655 = vmatprep.subr.bf16.mxu1 %v2965_v59  ;;  %v3337_v53 = vpack.c.bf16 %v456_v48, %v452_v33  ;;  %v2992_v48 = vld [vmem:[#allocation2 + $0x3e4] ss:$16 sps:$4 sm:$0xff]  }
 0x133   :  { %v281_v0 = vadd.f32 %v280_v11, %v3253_v25  ;;  %v282_v19 = vpop.f32.mrb[26].mxu0  ;;  %1378 = vmatprep.mubr.bf16.mxu0 %v495_v4  ;;  %1604 = vmatprep.mubr.bf16.mxu1 %v495_v4  ;;  %v3339_v59 = vpack.c.bf16 %v457_v51, %v453_v42  ;;  %v391_v60 = vpop.f32.mrb[24].mxu1  ;;  %v2995_v51 = vld [vmem:[#allocation2 + $0x3ec] ss:$16 sps:$4 sm:$0xff]  }
 0x134   :  { %v283_v28 = vadd.f32 %v282_v19, %v3249_v24  ;;  %v284_v30 = vpop.f32.mrb[27].mxu0  ;;  %1379 = vmatmul.mubr.bf16.gmra.mrb[52].mxu0 %v494_v2  ;;  %1605 = vmatmul.mubr.bf16.gmra.mrb[52].mxu1 %v494_v2  ;;  %v458_v44 = vmax.f32 %v279_v10, 0.0  ;;  %v2983_v2 = vld [vmem:[#allocation2 + $0x3ac] ss:$16 sps:$4 sm:$0xff]   ;;  %v392_v4 = vadd.f32 %v391_v60, %v3263_v38  ;;  %v393_v5 = vpop.f32.mrb[25].mxu1 }
 0x135   :  { %v285_v36 = vadd.f32 %v284_v30, %v3253_v25  ;;  %1430 = vmatpush1.bf16.msra.mxu0 %v2960_v6  ;;  %1656 = vmatpush1.bf16.msra.mxu1 %v2963_v7  ;;  %v459_v49 = vmax.f32 %v281_v0, 0.0  ;;  %v394_v9 = vadd.f32 %v393_v5, %v3267_v41  ;;  %v395_v10 = vpop.f32.mrb[26].mxu1  ;;  %v2990_v60 = vld [vmem:[#allocation2 + $0x3e0] ss:$16 sps:$4 sm:$0xff]  }
 0x136   :  { %v462_v45 = vmax.f32 %v283_v28, 0.0  ;;  %1431 = vmatprep.subr.bf16.mxu0 %v2968_v12  ;;  %1657 = vmatprep.subr.bf16.mxu1 %v2971_v13  ;;  %v2978_v13 = vld [vmem:[#allocation2 + $0x3a0] ss:$16 sps:$4 sm:$0xff]   ;;  %v460_v15 = vmax.f32 %v392_v4, 0.0  ;;  %v396_v16 = vadd.f32 %v395_v10, %v3263_v38  ;;  %v397_v0 = vpop.f32.mrb[27].mxu1  ;;  %v3000_v10 = vld [vmem:[#allocation5 + $0x48] sm:$0xff]  }
 0x137   :  { %v463_v50 = vmax.f32 %v285_v36, 0.0  ;;  %v461_v28 = vmax.f32 %v394_v9, 0.0  ;;  %v398_v30 = vadd.f32 %v397_v0, %v3267_v41  ;;  %v2996_v4 = vld [vmem:[#allocation5 + $0x40] sm:$0xff]   ;;  %v3007_v0 = vld [vmem:[#allocation5 + $0x90] sm:$0xff]  }
 0x138   :  { %v498_v52 = vpack.c.bf16 %v462_v45, %v458_v44  ;;  %v464_v34 = vmax.f32 %v396_v16, 0.0  ;;  %v2987_v44 = vld [vmem:[#allocation2 + $0x3c8] ss:$16 sps:$4 sm:$0xff]   ;;  %v2998_v5 = vld [vmem:[#allocation5 + $0xc0] sm:$0xff]   ;;  %v3005_v16 = vld [vmem:[#allocation5 + $0x10] sm:$0xff]  }
 0x139   :  { %v499_v54 = vpack.c.bf16 %v463_v50, %v459_v49  ;;  %1432 = vmatpush1.bf16.msra.mxu0 %v2966_v31  ;;  %v288_v55 = vpop.f32.mrb[28].mxu0  ;;  %1658 = vmatpush1.bf16.msra.mxu1 %v2969_v37  ;;  %v465_v37 = vmax.f32 %v398_v30, 0.0  ;;  %v2997_v9 = vld [vmem:[#allocation5] sm:$0xff]  }
 0x13a   :  { %v289_v61 = vadd.f32 %v288_v55, %v3249_v24  ;;  %v290_v62 = vpop.f32.mrb[29].mxu0  ;;  %1433 = vmatprep.subr.bf16.mxu0 %v2974_v39  ;;  %1659 = vmatprep.subr.bf16.mxu1 %v2977_v47  ;;  %v3349_v42 = vpack.c.bf16 %v464_v34, %v460_v15  ;;  %v3006_v15 = vld [vmem:[#allocation5 + $0xd0] sm:$0xff]   ;;  %v3013_v30 = vld [vmem:[#allocation5 + $0x20] sm:$0xff]  }
 0x13b   :  { %v291_v6 = vadd.f32 %v290_v62, %v3253_v25  ;;  %v292_v7 = vpop.f32.mrb[30].mxu0  ;;  %1388 = vmatprep.mubr.bf16.mxu0 %v499_v54  ;;  %1614 = vmatprep.mubr.bf16.mxu1 %v499_v54  ;;  %v3351_v45 = vpack.c.bf16 %v465_v37, %v461_v28  ;;  %v401_v47 = vpop.f32.mrb[28].mxu1  ;;  %v3014_v28 = vld [vmem:[#allocation5 + $0xe0] sm:$0xff]   ;;  %v3020_v34 = vld [vmem:[#allocation5 + $0x70] sm:$0xff]  }
 0x13c   :  { %v293_v11 = vadd.f32 %v292_v7, %v3249_v24  ;;  %v294_v12 = vpop.f32.mrb[31].mxu0  ;;  %1389 = vmatmul.mubr.bf16.gmra.mrb[56].mxu0 %v498_v52  ;;  %1615 = vmatmul.mubr.bf16.gmra.mrb[56].mxu1 %v498_v52  ;;  %v466_v31 = vmax.f32 %v289_v61, 0.0  ;;  %v2989_v24 = vld [vmem:[#allocation2 + $0x3cc] ss:$16 sps:$4 sm:$0xff]   ;;  %v402_v49 = vadd.f32 %v401_v47, %v3263_v38  ;;  %v403_v50 = vpop.f32.mrb[29].mxu1  ;;  %v3023_v37 = vld [vmem:[#allocation5 + $0xb0] sm:$0xff]  }
 0x13d   :  { %v295_v19 = vadd.f32 %v294_v12, %v3253_v25  ;;  %1434 = vmatpush1.bf16.msra.mxu0 %v2972_v56  ;;  %1660 = vmatpush1.bf16.msra.mxu1 %v2975_v57  ;;  %v467_v35 = vmax.f32 %v291_v6, 0.0  ;;  %v404_v52 = vadd.f32 %v403_v50, %v3267_v41  ;;  %v405_v54 = vpop.f32.mrb[30].mxu1  ;;  %v2993_v61 = vld [vmem:[#allocation2 + $0x3e8] ss:$16 sps:$4 sm:$0xff]  }
 0x13e   :  { %v470_v33 = vmax.f32 %v293_v11, 0.0  ;;  %1435 = vmatprep.subr.bf16.mxu0 %v2980_v1  ;;  %1661 = vmatprep.subr.bf16.mxu1 %v2983_v2  ;;  %v468_v55 = vmax.f32 %v402_v49, 0.0  ;;  %v406_v56 = vadd.f32 %v405_v54, %v3263_v38  ;;  %v407_v57 = vpop.f32.mrb[31].mxu1  ;;  %v3002_v11 = vld [vmem:[#allocation5 + $0xc8] sm:$0xff]  }
 0x13f   :  { %v471_v36 = vmax.f32 %v295_v19, 0.0  ;;  %v469_v62 = vmax.f32 %v404_v52, 0.0  ;;  %v408_v1 = vadd.f32 %v407_v57, %v3267_v41  ;;  %v2999_v41 = vld [vmem:[#allocation5 + $0x80] sm:$0xff]   ;;  %v3003_v12 = vld [vmem:[#allocation5 + $0x88] sm:$0xff]   ;;  %v3008_v19 = vld [vmem:[#allocation5 + $0x58] sm:$0xff]  }
 0x140   :  { %v502_v39 = vpack.c.bf16 %v470_v33, %v466_v31  ;;  %v472_v2 = vmax.f32 %v406_v56, 0.0  ;;  %v3015_v31 = vld [vmem:[#allocation5 + $0xa0] sm:$0xff]   ;;  %v3016_v33 = vld [vmem:[#allocation5 + $0x68] sm:$0xff]  }
 0x141   :  { %v503_v25 = vpack.c.bf16 %v471_v36, %v467_v35  ;;  %1436 = vmatpush1.bf16.msra.mxu0 %v2978_v13  ;;  %1662 = vmatpush1.bf16.msra.mxu1 %v2981_v22  ;;  %v473_v6 = vmax.f32 %v408_v1, 0.0  ;;  %v3004_v13 = vld [vmem:[#allocation5 + $0x50] sm:$0xff]   ;;  %v3011_v22 = vld [vmem:[#allocation5 + $0x98] sm:$0xff]  }
 0x142   :  { %1437 = vmatprep.subr.bf16.mxu0 %v2986_v26  ;;  %1663 = vmatprep.subr.bf16.mxu1 %v2989_v24  ;;  %v3359_v7 = vpack.c.bf16 %v472_v2, %v468_v55  ;;  %v3012_v26 = vld [vmem:[#allocation5 + $0x60] sm:$0xff]   ;;  %v3019_v24 = vld [vmem:[#allocation5 + $0xa8] sm:$0xff]   ;;  %v3022_v35 = vld [vmem:[#allocation5 + $0xf0] sm:$0xff]  }
 0x143   :  { %1398 = vmatprep.mubr.bf16.mxu0 %v503_v25  ;;  %1624 = vmatprep.mubr.bf16.mxu1 %v503_v25  ;;  %v3361_v38 = vpack.c.bf16 %v473_v6, %v469_v62  ;;  %v3021_v36 = vld [vmem:[#allocation5 + $0x30] sm:$0xff]  }
 0x144   :  { %1399 = vmatmul.mubr.bf16.gmra.mrb[60].mxu0 %v502_v39  ;;  %1625 = vmatmul.mubr.bf16.gmra.mrb[60].mxu1 %v502_v39 }
 0x145   :  { %1438 = vmatpush1.bf16.msra.mxu0 %v2984_v43  ;;  %1664 = vmatpush1.bf16.msra.mxu1 %v2987_v44 }
 0x146   :  { %1439 = vmatprep.subr.bf16.mxu0 %v2992_v48  ;;  %1441 = vmatprep.mubr.bf16.mxu0 %v3279_v18 }
 0x147   :  { %1665 = vmatprep.subr.bf16.mxu1 %v2995_v51  ;;  %1667 = vmatprep.mubr.bf16.mxu1 %v3279_v18  ;;  %v3001_v18 = vld [vmem:[#allocation5 + $0x8] sm:$0xff]  }
 0x149   :  { %1440 = vmatpush1.bf16.msra.mxu0 %v2990_v60  ;;  %1666 = vmatpush1.bf16.msra.mxu1 %v2993_v61 }
 0x14a   :  { %2526 = vmatprep.subr.bf16.mxu0 %v2996_v4  ;;  %2590 = vmatprep.subr.bf16.mxu1 %v2998_v5 }
 0x14c   :  { %1442 = vmatmul.mubr.bf16.vlgmr.msra.gmra.mrb[32].mxu0 %v3277_v14  ;;  %1668 = vmatmul.mubr.bf16.vlgmr.msra.gmra.mrb[32].mxu1 %v3277_v14  ;;  %v3010_v14 = vld [vmem:[#allocation5 + $0xd8] sm:$0xff]  }
 0x14d   :  { %1451 = vmatprep.mubr.bf16.mxu0 %v3291_v63  ;;  %1677 = vmatprep.mubr.bf16.mxu1 %v3291_v63  ;;  %v3009_v63 = vld [vmem:[#allocation5 + $0x18] sm:$0xff]  }
 0x14e   :  { %2527 = vmatpush3.bf16.msra.mxu0 %v2997_v9  ;;  %2591 = vmatpush3.bf16.msra.mxu1 %v2999_v41 }
 0x14f   :  { %2528 = vmatprep.subr.bf16.mxu0 %v3000_v10  ;;  %2592 = vmatprep.subr.bf16.mxu1 %v3002_v11 }
 0x152   :  { %2529 = vmatpush3.bf16.msra.mxu0 %v3001_v18  ;;  %2593 = vmatpush3.bf16.msra.mxu1 %v3003_v12 }
 0x153   :  { %2530 = vmatprep.subr.bf16.mxu0 %v3004_v13  ;;  %2594 = vmatprep.subr.bf16.mxu1 %v3006_v15 }
 0x154   :  { %1452 = vmatmul.mubr.bf16.gmra.mrb[36].mxu0 %v3289_v58  ;;  %1678 = vmatmul.mubr.bf16.gmra.mrb[36].mxu1 %v3289_v58  ;;  %v3018_v58 = vld [vmem:[#allocation5 + $0xe8] sm:$0xff]  }
 0x155   :  { %1461 = vmatprep.mubr.bf16.mxu0 %v3303_v46  ;;  %1687 = vmatprep.mubr.bf16.mxu1 %v3303_v46  ;;  %v3017_v46 = vld [vmem:[#allocation5 + $0x28] sm:$0xff]  }
 0x156   :  { %2531 = vmatpush3.bf16.msra.mxu0 %v3005_v16  ;;  %2595 = vmatpush3.bf16.msra.mxu1 %v3007_v0 }
 0x157   :  { %2532 = vmatprep.subr.bf16.mxu0 %v3008_v19  ;;  %2596 = vmatprep.subr.bf16.mxu1 %v3010_v14 }
 0x15a   :  { %2533 = vmatpush3.bf16.msra.mxu0 %v3009_v63  ;;  %2597 = vmatpush3.bf16.msra.mxu1 %v3011_v22 }
 0x15b   :  { %2534 = vmatprep.subr.bf16.mxu0 %v3012_v26  ;;  %2598 = vmatprep.subr.bf16.mxu1 %v3014_v28 }
 0x15c   :  { %1462 = vmatmul.mubr.bf16.gmra.mrb[40].mxu0 %v3301_v40  ;;  %1688 = vmatmul.mubr.bf16.gmra.mrb[40].mxu1 %v3301_v40  ;;  %v3024_v40 = vld [vmem:[#allocation5 + $0x78] sm:$0xff]  }
 0x15d   :  { %1471 = vmatprep.mubr.bf16.mxu0 %v3315_v27  ;;  %1697 = vmatprep.mubr.bf16.mxu1 %v3315_v27  ;;  %v3025_v27 = vld [vmem:[#allocation5 + $0x38] sm:$0xff]  }
 0x15e   :  { %2535 = vmatpush3.bf16.msra.mxu0 %v3013_v30  ;;  %2599 = vmatpush3.bf16.msra.mxu1 %v3015_v31 }
 0x15f   :  { %2536 = vmatprep.subr.bf16.mxu0 %v3016_v33  ;;  %2600 = vmatprep.subr.bf16.mxu1 %v3018_v58 }
 0x162   :  { %2537 = vmatpush3.bf16.msra.mxu0 %v3017_v46  ;;  %2601 = vmatpush3.bf16.msra.mxu1 %v3019_v24 }
 0x163   :  { %2538 = vmatprep.subr.bf16.mxu0 %v3020_v34  ;;  %2602 = vmatprep.subr.bf16.mxu1 %v3022_v35 }
 0x164   :  { %1472 = vmatmul.mubr.bf16.gmra.mrb[44].mxu0 %v3313_v17  ;;  %1698 = vmatmul.mubr.bf16.gmra.mrb[44].mxu1 %v3313_v17  ;;  %v3026_v17 = vld [vmem:[#allocation5 + $0xf8] sm:$0xff]  }
 0x165   :  { %1481 = vmatprep.mubr.bf16.mxu0 %v3327_v8  ;;  %1707 = vmatprep.mubr.bf16.mxu1 %v3327_v8  ;;  %v634_v8 = vld [vmem:[%s3513_s4] sm:$0xf] }
 0x166   :  { %2539 = vmatpush3.bf16.msra.mxu0 %v3021_v36  ;;  %2603 = vmatpush3.bf16.msra.mxu1 %v3023_v37  ;;  %v3406_v39 = vrot.slane %v634_v8, %v82_v23 }
 0x167   :  { %2540 = vmatprep.subr.bf16.mxu0 %v3024_v40  ;;  %2604 = vmatprep.subr.bf16.mxu1 %v3026_v17 }
 0x16a   :  { %2541 = vmatpush3.bf16.msra.mxu0 %v3025_v27 }
 0x16c   :  { %1482 = vmatmul.mubr.bf16.gmra.mrb[48].mxu0 %v3325_v3  ;;  %1708 = vmatmul.mubr.bf16.gmra.mrb[48].mxu1 %v3325_v3  ;;  %v3027_v3 = vld [vmem:[#allocation5 + $0xb8] sm:$0xff]  }
 0x16d   :  { %1491 = vmatprep.mubr.bf16.mxu0 %v3339_v59  ;;  %1717 = vmatprep.mubr.bf16.mxu1 %v3339_v59  ;;  %v3402_v59 = vrot.slane %v634_v8, %v86_v29 }
 0x16e   :  { %2605 = vmatpush3.bf16.msra.mxu1 %v3027_v3 }
 0x174   :  { %1492 = vmatmul.mubr.bf16.gmra.mrb[52].mxu0 %v3337_v53  ;;  %1718 = vmatmul.mubr.bf16.gmra.mrb[52].mxu1 %v3337_v53  ;;  %v3398_v53 = vrot.slane %v634_v8, %v78_v21 }
 0x175   :  { %1501 = vmatprep.mubr.bf16.mxu0 %v3351_v45  ;;  %1727 = vmatprep.mubr.bf16.mxu1 %v3351_v45 }
 0x17c   :  { %1502 = vmatmul.mubr.bf16.gmra.mrb[56].mxu0 %v3349_v42  ;;  %1728 = vmatmul.mubr.bf16.gmra.mrb[56].mxu1 %v3349_v42  ;;  %v3410_v42 = vrot.slane %v634_v8, %v90_v32 }
 0x17d   :  { %1511 = vmatprep.mubr.bf16.mxu0 %v3361_v38  ;;  %1737 = vmatprep.mubr.bf16.mxu1 %v3361_v38 }
 0x184   :  { %1512 = vmatmul.mubr.bf16.gmra.mrb[60].mxu0 %v3359_v7  ;;  %1738 = vmatmul.mubr.bf16.gmra.mrb[60].mxu1 %v3359_v7 }
 0x21f   :  { %v1443_v25 = vpop.f32.mrb[32].mxu0  ;;  %v1669_v43 = vpop.f32.mrb[32].mxu1 }
 0x220   :  { %v2654_v44 = vadd.f32 %v1443_v25, %v3398_v53  ;;  %v2686_v45 = vadd.f32 %v1669_v43, %v3402_v59  ;;  %v1445_v21 = vpop.f32.mrb[33].mxu0  ;;  %v1671_v47 = vpop.f32.mrb[33].mxu1 }
 0x221   :  { %v2655_v48 = vadd.f32 %v1445_v21, %v3406_v39  ;;  %v2687_v29 = vadd.f32 %v1671_v47, %v3410_v42  ;;  %v1447_v49 = vpop.f32.mrb[34].mxu0  ;;  %v1673_v50 = vpop.f32.mrb[34].mxu1 }
 0x222   :  { %v2656_v23 = vadd.f32 %v1447_v49, %v3398_v53  ;;  %v2688_v20 = vadd.f32 %v1673_v50, %v3402_v59  ;;  %v1449_v32 = vpop.f32.mrb[35].mxu0  ;;  %v1675_v51 = vpop.f32.mrb[35].mxu1  ;;  %v1748_v55 = vmax.f32 %v2654_v44, 0.0  ;;  %v1750_v56 = vmax.f32 %v2686_v45, 0.0 }
 0x223   :  { %v2657_v52 = vadd.f32 %v1449_v32, %v3406_v39  ;;  %v2689_v54 = vadd.f32 %v1675_v51, %v3410_v42  ;;  %v1749_v61 = vmax.f32 %v2655_v48, 0.0  ;;  %v1751_v62 = vmax.f32 %v2687_v29, 0.0 }
 0x224   :  { %v1752_v57 = vmax.f32 %v2656_v23, 0.0  ;;  %v1754_v60 = vmax.f32 %v2688_v20, 0.0 }
 0x225   :  { %v1753_v1 = vmax.f32 %v2657_v52, 0.0  ;;  %v1755_v2 = vmax.f32 %v2689_v54, 0.0 }
 0x226   :  { %v1812_v4 = vpack.c.bf16 %v1752_v57, %v1748_v55  ;;  %v1814_v5 = vpack.c.bf16 %v1754_v60, %v1750_v56 }
 0x227   :  { %v1813_v6 = vpack.c.bf16 %v1753_v1, %v1749_v61  ;;  %v1815_v7 = vpack.c.bf16 %v1755_v2, %v1751_v62  ;;  %v1453_v38 = vpop.f32.mrb[36].mxu0  ;;  %v1679_v9 = vpop.f32.mrb[36].mxu1 }
 0x228   :  { %v2658_v41 = vadd.f32 %v1453_v38, %v3398_v53  ;;  %v2690_v10 = vadd.f32 %v1679_v9, %v3402_v59  ;;  %v1455_v11 = vpop.f32.mrb[37].mxu0  ;;  %v1681_v18 = vpop.f32.mrb[37].mxu1 }
 0x229   :  { %v2659_v12 = vadd.f32 %v1455_v11, %v3406_v39  ;;  %v2691_v13 = vadd.f32 %v1681_v18, %v3410_v42  ;;  %v1457_v15 = vpop.f32.mrb[38].mxu0  ;;  %v1683_v16 = vpop.f32.mrb[38].mxu1  ;;  %2139 = vmatprep.mubr.bf16.mxu0 %v1813_v6  ;;  %2236 = vmatprep.mubr.bf16.mxu1 %v1815_v7 }
 0x22a   :  { %v2660_v0 = vadd.f32 %v1457_v15, %v3398_v53  ;;  %v2692_v19 = vadd.f32 %v1683_v16, %v3402_v59  ;;  %v1459_v14 = vpop.f32.mrb[39].mxu0  ;;  %v1685_v63 = vpop.f32.mrb[39].mxu1  ;;  %2140 = vmatmul.mubr.bf16.vlgmr.msra.gmra.mrb[64].mxu0 %v1812_v4  ;;  %2237 = vmatmul.mubr.bf16.vlgmr.msra.gmra.mrb[64].mxu1 %v1814_v5  ;;  %v1756_v28 = vmax.f32 %v2658_v41, 0.0  ;;  %v1758_v30 = vmax.f32 %v2690_v10, 0.0 }
 0x22b   :  { %v2661_v22 = vadd.f32 %v1459_v14, %v3406_v39  ;;  %v2693_v26 = vadd.f32 %v1685_v63, %v3410_v42  ;;  %v1757_v58 = vmax.f32 %v2659_v12, 0.0  ;;  %v1759_v46 = vmax.f32 %v2691_v13, 0.0 }
 0x22c   :  { %v1760_v31 = vmax.f32 %v2660_v0, 0.0  ;;  %v1762_v33 = vmax.f32 %v2692_v19, 0.0 }
 0x22d   :  { %v1761_v24 = vmax.f32 %v2661_v22, 0.0  ;;  %v1763_v34 = vmax.f32 %v2693_v26, 0.0 }
 0x22e   :  { %v1816_v35 = vpack.c.bf16 %v1760_v31, %v1756_v28  ;;  %v1818_v36 = vpack.c.bf16 %v1762_v33, %v1758_v30 }
 0x22f   :  { %v1817_v37 = vpack.c.bf16 %v1761_v24, %v1757_v58  ;;  %v1819_v40 = vpack.c.bf16 %v1763_v34, %v1759_v46  ;;  %v1463_v17 = vpop.f32.mrb[40].mxu0  ;;  %v1689_v27 = vpop.f32.mrb[40].mxu1 }
 0x230   :  { %v2662_v3 = vadd.f32 %v1463_v17, %v3398_v53  ;;  %v2694_v8 = vadd.f32 %v1689_v27, %v3402_v59  ;;  %v1465_v25 = vpop.f32.mrb[41].mxu0  ;;  %v1691_v43 = vpop.f32.mrb[41].mxu1 }
 0x231   :  { %v2663_v44 = vadd.f32 %v1465_v25, %v3406_v39  ;;  %v2695_v45 = vadd.f32 %v1691_v43, %v3410_v42  ;;  %v1467_v21 = vpop.f32.mrb[42].mxu0  ;;  %v1693_v47 = vpop.f32.mrb[42].mxu1  ;;  %2147 = vmatprep.mubr.bf16.mxu0 %v1817_v37  ;;  %2244 = vmatprep.mubr.bf16.mxu1 %v1819_v40 }
 0x232   :  { %v2664_v48 = vadd.f32 %v1467_v21, %v3398_v53  ;;  %v2696_v29 = vadd.f32 %v1693_v47, %v3402_v59  ;;  %v1469_v49 = vpop.f32.mrb[43].mxu0  ;;  %v1695_v50 = vpop.f32.mrb[43].mxu1  ;;  %2148 = vmatmul.mubr.bf16.gmra.mrb[68].mxu0 %v1816_v35  ;;  %2245 = vmatmul.mubr.bf16.gmra.mrb[68].mxu1 %v1818_v36  ;;  %v1764_v32 = vmax.f32 %v2662_v3, 0.0  ;;  %v1766_v51 = vmax.f32 %v2694_v8, 0.0 }
 0x233   :  { %v2665_v23 = vadd.f32 %v1469_v49, %v3406_v39  ;;  %v2697_v20 = vadd.f32 %v1695_v50, %v3410_v42  ;;  %v1765_v55 = vmax.f32 %v2663_v44, 0.0  ;;  %v1767_v56 = vmax.f32 %v2695_v45, 0.0 }
 0x234   :  { %v1768_v52 = vmax.f32 %v2664_v48, 0.0  ;;  %v1770_v54 = vmax.f32 %v2696_v29, 0.0 }
 0x235   :  { %v1769_v57 = vmax.f32 %v2665_v23, 0.0  ;;  %v1771_v60 = vmax.f32 %v2697_v20, 0.0 }
 0x236   :  { %v1820_v61 = vpack.c.bf16 %v1768_v52, %v1764_v32  ;;  %v1822_v62 = vpack.c.bf16 %v1770_v54, %v1766_v51 }
 0x237   :  { %v1821_v1 = vpack.c.bf16 %v1769_v57, %v1765_v55  ;;  %v1823_v2 = vpack.c.bf16 %v1771_v60, %v1767_v56  ;;  %v1473_v4 = vpop.f32.mrb[44].mxu0  ;;  %v1699_v5 = vpop.f32.mrb[44].mxu1 }
 0x238   :  { %v2666_v6 = vadd.f32 %v1473_v4, %v3398_v53  ;;  %v2698_v7 = vadd.f32 %v1699_v5, %v3402_v59  ;;  %v1475_v38 = vpop.f32.mrb[45].mxu0  ;;  %v1701_v9 = vpop.f32.mrb[45].mxu1 }
 0x239   :  { %v2667_v41 = vadd.f32 %v1475_v38, %v3406_v39  ;;  %v2699_v10 = vadd.f32 %v1701_v9, %v3410_v42  ;;  %v1477_v11 = vpop.f32.mrb[46].mxu0  ;;  %v1703_v18 = vpop.f32.mrb[46].mxu1  ;;  %2155 = vmatprep.mubr.bf16.mxu0 %v1821_v1  ;;  %2252 = vmatprep.mubr.bf16.mxu1 %v1823_v2 }
 0x23a   :  { %v2668_v12 = vadd.f32 %v1477_v11, %v3398_v53  ;;  %v2700_v13 = vadd.f32 %v1703_v18, %v3402_v59  ;;  %v1479_v15 = vpop.f32.mrb[47].mxu0  ;;  %v1705_v16 = vpop.f32.mrb[47].mxu1  ;;  %2156 = vmatmul.mubr.bf16.gmra.mrb[72].mxu0 %v1820_v61  ;;  %2253 = vmatmul.mubr.bf16.gmra.mrb[72].mxu1 %v1822_v62  ;;  %v1772_v14 = vmax.f32 %v2666_v6, 0.0  ;;  %v1774_v63 = vmax.f32 %v2698_v7, 0.0 }
 0x23b   :  { %v2669_v0 = vadd.f32 %v1479_v15, %v3406_v39  ;;  %v2701_v19 = vadd.f32 %v1705_v16, %v3410_v42  ;;  %v1773_v28 = vmax.f32 %v2667_v41, 0.0  ;;  %v1775_v30 = vmax.f32 %v2699_v10, 0.0 }
 0x23c   :  { %v1776_v22 = vmax.f32 %v2668_v12, 0.0  ;;  %v1778_v26 = vmax.f32 %v2700_v13, 0.0 }
 0x23d   :  { %v1777_v31 = vmax.f32 %v2669_v0, 0.0  ;;  %v1779_v33 = vmax.f32 %v2701_v19, 0.0 }
 0x23e   :  { %v1824_v58 = vpack.c.bf16 %v1776_v22, %v1772_v14  ;;  %v1826_v46 = vpack.c.bf16 %v1778_v26, %v1774_v63 }
 0x23f   :  { %v1825_v24 = vpack.c.bf16 %v1777_v31, %v1773_v28  ;;  %v1827_v34 = vpack.c.bf16 %v1779_v33, %v1775_v30  ;;  %v1483_v35 = vpop.f32.mrb[48].mxu0  ;;  %v1709_v36 = vpop.f32.mrb[48].mxu1 }
 0x240   :  { %v2670_v37 = vadd.f32 %v1483_v35, %v3398_v53  ;;  %v2702_v40 = vadd.f32 %v1709_v36, %v3402_v59  ;;  %v1485_v17 = vpop.f32.mrb[49].mxu0  ;;  %v1711_v27 = vpop.f32.mrb[49].mxu1 }
 0x241   :  { %v2671_v3 = vadd.f32 %v1485_v17, %v3406_v39  ;;  %v2703_v8 = vadd.f32 %v1711_v27, %v3410_v42  ;;  %v1487_v25 = vpop.f32.mrb[50].mxu0  ;;  %v1713_v43 = vpop.f32.mrb[50].mxu1  ;;  %2163 = vmatprep.mubr.bf16.mxu0 %v1825_v24  ;;  %2260 = vmatprep.mubr.bf16.mxu1 %v1827_v34 }
 0x242   :  { %v2672_v44 = vadd.f32 %v1487_v25, %v3398_v53  ;;  %v2704_v45 = vadd.f32 %v1713_v43, %v3402_v59  ;;  %v1489_v21 = vpop.f32.mrb[51].mxu0  ;;  %v1715_v47 = vpop.f32.mrb[51].mxu1  ;;  %2164 = vmatmul.mubr.bf16.gmra.mrb[76].mxu0 %v1824_v58  ;;  %2261 = vmatmul.mubr.bf16.gmra.mrb[76].mxu1 %v1826_v46  ;;  %v1780_v49 = vmax.f32 %v2670_v37, 0.0  ;;  %v1782_v50 = vmax.f32 %v2702_v40, 0.0 }
 0x243   :  { %v2673_v48 = vadd.f32 %v1489_v21, %v3406_v39  ;;  %v2705_v29 = vadd.f32 %v1715_v47, %v3410_v42  ;;  %v1781_v32 = vmax.f32 %v2671_v3, 0.0  ;;  %v1783_v51 = vmax.f32 %v2703_v8, 0.0 }
 0x244   :  { %v1784_v23 = vmax.f32 %v2672_v44, 0.0  ;;  %v1786_v20 = vmax.f32 %v2704_v45, 0.0 }
 0x245   :  { %v1785_v52 = vmax.f32 %v2673_v48, 0.0  ;;  %v1787_v54 = vmax.f32 %v2705_v29, 0.0 }
 0x246   :  { %v1828_v55 = vpack.c.bf16 %v1784_v23, %v1780_v49  ;;  %v1830_v56 = vpack.c.bf16 %v1786_v20, %v1782_v50 }
 0x247   :  { %v1829_v57 = vpack.c.bf16 %v1785_v52, %v1781_v32  ;;  %v1831_v60 = vpack.c.bf16 %v1787_v54, %v1783_v51  ;;  %v1493_v61 = vpop.f32.mrb[52].mxu0  ;;  %v1719_v62 = vpop.f32.mrb[52].mxu1 }
 0x248   :  { %v2674_v1 = vadd.f32 %v1493_v61, %v3398_v53  ;;  %v2706_v2 = vadd.f32 %v1719_v62, %v3402_v59  ;;  %v1495_v4 = vpop.f32.mrb[53].mxu0  ;;  %v1721_v5 = vpop.f32.mrb[53].mxu1 }
 0x249   :  { %v2675_v6 = vadd.f32 %v1495_v4, %v3406_v39  ;;  %v2707_v7 = vadd.f32 %v1721_v5, %v3410_v42  ;;  %v1497_v38 = vpop.f32.mrb[54].mxu0  ;;  %v1723_v9 = vpop.f32.mrb[54].mxu1  ;;  %2171 = vmatprep.mubr.bf16.mxu0 %v1829_v57  ;;  %2268 = vmatprep.mubr.bf16.mxu1 %v1831_v60 }
 0x24a   :  { %v2676_v41 = vadd.f32 %v1497_v38, %v3398_v53  ;;  %v2708_v10 = vadd.f32 %v1723_v9, %v3402_v59  ;;  %v1499_v11 = vpop.f32.mrb[55].mxu0  ;;  %v1725_v18 = vpop.f32.mrb[55].mxu1  ;;  %2172 = vmatmul.mubr.bf16.gmra.mrb[80].mxu0 %v1828_v55  ;;  %2269 = vmatmul.mubr.bf16.gmra.mrb[80].mxu1 %v1830_v56  ;;  %v1788_v15 = vmax.f32 %v2674_v1, 0.0  ;;  %v1790_v16 = vmax.f32 %v2706_v2, 0.0 }
 0x24b   :  { %v2677_v12 = vadd.f32 %v1499_v11, %v3406_v39  ;;  %v2709_v13 = vadd.f32 %v1725_v18, %v3410_v42  ;;  %v1789_v14 = vmax.f32 %v2675_v6, 0.0  ;;  %v1791_v63 = vmax.f32 %v2707_v7, 0.0 }
 0x24c   :  { %v1792_v0 = vmax.f32 %v2676_v41, 0.0  ;;  %v1794_v19 = vmax.f32 %v2708_v10, 0.0 }
 0x24d   :  { %v1793_v22 = vmax.f32 %v2677_v12, 0.0  ;;  %v1795_v26 = vmax.f32 %v2709_v13, 0.0 }
 0x24e   :  { %v1832_v28 = vpack.c.bf16 %v1792_v0, %v1788_v15  ;;  %v1834_v30 = vpack.c.bf16 %v1794_v19, %v1790_v16 }
 0x24f   :  { %v1833_v31 = vpack.c.bf16 %v1793_v22, %v1789_v14  ;;  %v1835_v33 = vpack.c.bf16 %v1795_v26, %v1791_v63  ;;  %v1503_v58 = vpop.f32.mrb[56].mxu0  ;;  %v1729_v46 = vpop.f32.mrb[56].mxu1 }
 0x250   :  { %v2678_v24 = vadd.f32 %v1503_v58, %v3398_v53  ;;  %v2710_v34 = vadd.f32 %v1729_v46, %v3402_v59  ;;  %v1505_v35 = vpop.f32.mrb[57].mxu0  ;;  %v1731_v36 = vpop.f32.mrb[57].mxu1 }
 0x251   :  { %v2679_v37 = vadd.f32 %v1505_v35, %v3406_v39  ;;  %v2711_v40 = vadd.f32 %v1731_v36, %v3410_v42  ;;  %v1507_v17 = vpop.f32.mrb[58].mxu0  ;;  %v1733_v27 = vpop.f32.mrb[58].mxu1  ;;  %2179 = vmatprep.mubr.bf16.mxu0 %v1833_v31  ;;  %2276 = vmatprep.mubr.bf16.mxu1 %v1835_v33 }
 0x252   :  { %v2680_v3 = vadd.f32 %v1507_v17, %v3398_v53  ;;  %v2712_v8 = vadd.f32 %v1733_v27, %v3402_v59  ;;  %v1509_v25 = vpop.f32.mrb[59].mxu0  ;;  %v1735_v43 = vpop.f32.mrb[59].mxu1  ;;  %2180 = vmatmul.mubr.bf16.gmra.mrb[84].mxu0 %v1832_v28  ;;  %2277 = vmatmul.mubr.bf16.gmra.mrb[84].mxu1 %v1834_v30  ;;  %v1796_v21 = vmax.f32 %v2678_v24, 0.0  ;;  %v1798_v47 = vmax.f32 %v2710_v34, 0.0 }
 0x253   :  { %v2681_v44 = vadd.f32 %v1509_v25, %v3406_v39  ;;  %v2713_v45 = vadd.f32 %v1735_v43, %v3410_v42  ;;  %v1797_v49 = vmax.f32 %v2679_v37, 0.0  ;;  %v1799_v50 = vmax.f32 %v2711_v40, 0.0 }
 0x254   :  { %v1800_v48 = vmax.f32 %v2680_v3, 0.0  ;;  %v1802_v29 = vmax.f32 %v2712_v8, 0.0 }
 0x255   :  { %v1801_v23 = vmax.f32 %v2681_v44, 0.0  ;;  %v1803_v20 = vmax.f32 %v2713_v45, 0.0 }
 0x256   :  { %v1836_v32 = vpack.c.bf16 %v1800_v48, %v1796_v21  ;;  %v1838_v51 = vpack.c.bf16 %v1802_v29, %v1798_v47 }
 0x257   :  { %v1837_v52 = vpack.c.bf16 %v1801_v23, %v1797_v49  ;;  %v1839_v54 = vpack.c.bf16 %v1803_v20, %v1799_v50  ;;  %v1513_v55 = vpop.f32.mrb[60].mxu0  ;;  %v1739_v56 = vpop.f32.mrb[60].mxu1 }
 0x258   :  { %v2682_v57 = vadd.f32 %v1513_v55, %v3398_v53  ;;  %v2714_v60 = vadd.f32 %v1739_v56, %v3402_v59  ;;  %v1515_v61 = vpop.f32.mrb[61].mxu0  ;;  %v1741_v62 = vpop.f32.mrb[61].mxu1 }
 0x259   :  { %v2683_v1 = vadd.f32 %v1515_v61, %v3406_v39  ;;  %v2715_v2 = vadd.f32 %v1741_v62, %v3410_v42  ;;  %v1517_v4 = vpop.f32.mrb[62].mxu0  ;;  %v1743_v5 = vpop.f32.mrb[62].mxu1  ;;  %2187 = vmatprep.mubr.bf16.mxu0 %v1837_v52  ;;  %2284 = vmatprep.mubr.bf16.mxu1 %v1839_v54 }
 0x25a   :  { %v2684_v6 = vadd.f32 %v1517_v4, %v3398_v53  ;;  %v2716_v7 = vadd.f32 %v1743_v5, %v3402_v59  ;;  %v1519_v38 = vpop.f32.mrb[63].mxu0  ;;  %v1745_v9 = vpop.f32.mrb[63].mxu1  ;;  %2188 = vmatmul.mubr.bf16.gmra.mrb[88].mxu0 %v1836_v32  ;;  %2285 = vmatmul.mubr.bf16.gmra.mrb[88].mxu1 %v1838_v51  ;;  %v1804_v11 = vmax.f32 %v2682_v57, 0.0  ;;  %v1806_v18 = vmax.f32 %v2714_v60, 0.0 }
 0x25b   :  { %v2685_v41 = vadd.f32 %v1519_v38, %v3406_v39  ;;  %v2717_v10 = vadd.f32 %v1745_v9, %v3410_v42  ;;  %v1805_v15 = vmax.f32 %v2683_v1, 0.0  ;;  %v1807_v16 = vmax.f32 %v2715_v2, 0.0  ;;  %v3479_v42 = vld [vmem:[%s3515_s6] ss:$0 sm:$0xff]  ;;  %s3107_s6 = smov [#allocation7]  }
 0x25c   :  { %v1808_v12 = vmax.f32 %v2684_v6, 0.0  ;;  %v1810_v13 = vmax.f32 %v2716_v7, 0.0  ;;  %s2322_s25 = sshll.u32 %s3107_s6, 4  ;;  %s2323_s25 = int_to_ptr.vmem [resolvable:$true] %s2322_s25 }
 0x25d   :  { %v1809_v0 = vmax.f32 %v2685_v41, 0.0  ;;  %v1811_v19 = vmax.f32 %v2717_v10, 0.0  ;;  %s3072_s26 = scalar_lea.vmem %s2323_s25, 2048  ;;  %p3077_p3 = scmp.lt.s32.totalorder %s2323_s25, %s2323_s25 }
 0x25e   :  { %v1840_v14 = vpack.c.bf16 %v1808_v12, %v1804_v11  ;;  %v1842_v53 = vpack.c.bf16 %v1810_v13, %v1806_v18  ;;  %p3073_p2 = scmp.ne.s32.totalorder %s2323_s25, %s3072_s26  ;;  %p3078_p4 = scmp.lt.s32.totalorder %s3072_s26, %s3072_s26 }
 0x25f   :  { %v1841_v63 = vpack.c.bf16 %v1809_v0, %v1805_v15  ;;  %v1843_v59 = vpack.c.bf16 %v1811_v19, %v1807_v16 }
 0x260   :  { %p3079_p5 = por %p3078_p4, %p3077_p3 }
 0x261   :  { %2195 = vmatprep.mubr.bf16.mxu0 %v1841_v63  ;;  %2292 = vmatprep.mubr.bf16.mxu1 %v1843_v59 }
 0x262   :  { %2196 = vmatmul.mubr.bf16.gmra.mrb[92].mxu0 %v1840_v14  ;;  %2293 = vmatmul.mubr.bf16.gmra.mrb[92].mxu1 %v1842_v53  ;;  %p3080_p6 = pnand %p3079_p5, %p3073_p2 }
 0x2fd   :  { %v2542_v22 = vpop.f32.mrb[64].mxu0  ;;  %v2606_v39 = vpop.f32.mrb[64].mxu1 }
 0x2fe   :  { %v2543_v26 = vpop.f32.mrb[65].mxu0  ;;  %v2607_v28 = vpop.f32.mrb[65].mxu1 }
 0x2ff   :  { %v2544_v30 = vadd.f32 %v2543_v26, %v2542_v22  ;;  %v2608_v31 = vadd.f32 %v2607_v28, %v2606_v39  ;;  %v2545_v33 = vpop.f32.mrb[66].mxu0  ;;  %v2609_v58 = vpop.f32.mrb[66].mxu1 }
 0x300   :  { %v2546_v46 = vpop.f32.mrb[67].mxu0  ;;  %v2610_v24 = vpop.f32.mrb[67].mxu1 }
 0x301   :  { %v2142_v34 = vadd.f32 %v2544_v30, %v3479_v42  ;;  %v2547_v35 = vadd.f32 %v2546_v46, %v2545_v33  ;;  %v2611_v36 = vadd.f32 %v2610_v24, %v2609_v58 }
 0x303   :  { %v2239_v37 = vadd.f32 %v2608_v31, %v2142_v34  ;;  %v2145_v40 = vadd.f32 %v2547_v35, %v3479_v42 }
 0x305   :  { %2301 = vst [vmem:[#allocation7] sm:$0xff] %v2239_v37  ;;  %v2242_v17 = vadd.f32 %v2611_v36, %v2145_v40  ;;  %v2548_v27 = vpop.f32.mrb[68].mxu0  ;;  %v2612_v3 = vpop.f32.mrb[68].mxu1 }
 0x306   :  { %v2549_v8 = vpop.f32.mrb[69].mxu0  ;;  %v2613_v25 = vpop.f32.mrb[69].mxu1 }
 0x307   :  { %2302 = vst [vmem:[#allocation7 + $0x8] sm:$0xff] %v2242_v17  ;;  %v2550_v43 = vadd.f32 %v2549_v8, %v2548_v27  ;;  %v2614_v44 = vadd.f32 %v2613_v25, %v2612_v3  ;;  %v2551_v45 = vpop.f32.mrb[70].mxu0  ;;  %v2615_v21 = vpop.f32.mrb[70].mxu1 }
 0x308   :  { %v2552_v47 = vpop.f32.mrb[71].mxu0  ;;  %v2616_v48 = vpop.f32.mrb[71].mxu1 }
 0x309   :  { %v2150_v29 = vadd.f32 %v2550_v43, %v3479_v42  ;;  %v2553_v49 = vadd.f32 %v2552_v47, %v2551_v45  ;;  %v2617_v50 = vadd.f32 %v2616_v48, %v2615_v21 }
 0x30b   :  { %v2247_v23 = vadd.f32 %v2614_v44, %v2150_v29  ;;  %v2153_v20 = vadd.f32 %v2553_v49, %v3479_v42 }
 0x30d   :  { %2303 = vst [vmem:[#allocation7 + $0x10] sm:$0xff] %v2247_v23  ;;  %v2250_v32 = vadd.f32 %v2617_v50, %v2153_v20  ;;  %v2554_v51 = vpop.f32.mrb[72].mxu0  ;;  %v2618_v52 = vpop.f32.mrb[72].mxu1 }
 0x30e   :  { %v2555_v54 = vpop.f32.mrb[73].mxu0  ;;  %v2619_v55 = vpop.f32.mrb[73].mxu1 }
 0x30f   :  { %2304 = vst [vmem:[#allocation7 + $0x18] sm:$0xff] %v2250_v32  ;;  %v2556_v56 = vadd.f32 %v2555_v54, %v2554_v51  ;;  %v2620_v57 = vadd.f32 %v2619_v55, %v2618_v52  ;;  %v2557_v60 = vpop.f32.mrb[74].mxu0  ;;  %v2621_v61 = vpop.f32.mrb[74].mxu1 }
 0x310   :  { %v2558_v62 = vpop.f32.mrb[75].mxu0  ;;  %v2622_v1 = vpop.f32.mrb[75].mxu1 }
 0x311   :  { %v2158_v2 = vadd.f32 %v2556_v56, %v3479_v42  ;;  %v2559_v4 = vadd.f32 %v2558_v62, %v2557_v60  ;;  %v2623_v5 = vadd.f32 %v2622_v1, %v2621_v61 }
 0x313   :  { %v2255_v6 = vadd.f32 %v2620_v57, %v2158_v2  ;;  %v2161_v7 = vadd.f32 %v2559_v4, %v3479_v42 }
 0x315   :  { %2305 = vst [vmem:[#allocation7 + $0x20] sm:$0xff] %v2255_v6  ;;  %v2258_v38 = vadd.f32 %v2623_v5, %v2161_v7  ;;  %v2560_v9 = vpop.f32.mrb[76].mxu0  ;;  %v2624_v41 = vpop.f32.mrb[76].mxu1 }
 0x316   :  { %v2561_v10 = vpop.f32.mrb[77].mxu0  ;;  %v2625_v11 = vpop.f32.mrb[77].mxu1 }
 0x317   :  { %2306 = vst [vmem:[#allocation7 + $0x28] sm:$0xff] %v2258_v38  ;;  %v2562_v18 = vadd.f32 %v2561_v10, %v2560_v9  ;;  %v2626_v12 = vadd.f32 %v2625_v11, %v2624_v41  ;;  %v2563_v13 = vpop.f32.mrb[78].mxu0  ;;  %v2627_v15 = vpop.f32.mrb[78].mxu1 }
 0x318   :  { %v2564_v16 = vpop.f32.mrb[79].mxu0  ;;  %v2628_v0 = vpop.f32.mrb[79].mxu1 }
 0x319   :  { %v2166_v19 = vadd.f32 %v2562_v18, %v3479_v42  ;;  %v2565_v14 = vadd.f32 %v2564_v16, %v2563_v13  ;;  %v2629_v53 = vadd.f32 %v2628_v0, %v2627_v15 }
 0x31b   :  { %v2263_v63 = vadd.f32 %v2626_v12, %v2166_v19  ;;  %v2169_v59 = vadd.f32 %v2565_v14, %v3479_v42 }
 0x31d   :  { %2307 = vst [vmem:[#allocation7 + $0x30] sm:$0xff] %v2263_v63  ;;  %v2266_v22 = vadd.f32 %v2629_v53, %v2169_v59  ;;  %v2566_v39 = vpop.f32.mrb[80].mxu0  ;;  %v2630_v26 = vpop.f32.mrb[80].mxu1 }
 0x31e   :  { %v2567_v28 = vpop.f32.mrb[81].mxu0  ;;  %v2631_v30 = vpop.f32.mrb[81].mxu1 }
 0x31f   :  { %2308 = vst [vmem:[#allocation7 + $0x38] sm:$0xff] %v2266_v22  ;;  %v2568_v31 = vadd.f32 %v2567_v28, %v2566_v39  ;;  %v2632_v33 = vadd.f32 %v2631_v30, %v2630_v26  ;;  %v2569_v58 = vpop.f32.mrb[82].mxu0  ;;  %v2633_v46 = vpop.f32.mrb[82].mxu1 }
 0x320   :  { %v2570_v24 = vpop.f32.mrb[83].mxu0  ;;  %v2634_v34 = vpop.f32.mrb[83].mxu1 }
 0x321   :  { %v2174_v35 = vadd.f32 %v2568_v31, %v3479_v42  ;;  %v2571_v36 = vadd.f32 %v2570_v24, %v2569_v58  ;;  %v2635_v37 = vadd.f32 %v2634_v34, %v2633_v46 }
 0x323   :  { %v2271_v40 = vadd.f32 %v2632_v33, %v2174_v35  ;;  %v2177_v17 = vadd.f32 %v2571_v36, %v3479_v42 }
 0x325   :  { %2309 = vst [vmem:[#allocation7 + $0x40] sm:$0xff] %v2271_v40  ;;  %v2274_v27 = vadd.f32 %v2635_v37, %v2177_v17  ;;  %v2572_v3 = vpop.f32.mrb[84].mxu0  ;;  %v2636_v8 = vpop.f32.mrb[84].mxu1 }
 0x326   :  { %v2573_v25 = vpop.f32.mrb[85].mxu0  ;;  %v2637_v43 = vpop.f32.mrb[85].mxu1 }
 0x327   :  { %2310 = vst [vmem:[#allocation7 + $0x48] sm:$0xff] %v2274_v27  ;;  %v2574_v44 = vadd.f32 %v2573_v25, %v2572_v3  ;;  %v2638_v45 = vadd.f32 %v2637_v43, %v2636_v8  ;;  %v2575_v21 = vpop.f32.mrb[86].mxu0  ;;  %v2639_v47 = vpop.f32.mrb[86].mxu1 }
 0x328   :  { %v2576_v48 = vpop.f32.mrb[87].mxu0  ;;  %v2640_v29 = vpop.f32.mrb[87].mxu1 }
 0x329   :  { %v2182_v49 = vadd.f32 %v2574_v44, %v3479_v42  ;;  %v2577_v50 = vadd.f32 %v2576_v48, %v2575_v21  ;;  %v2641_v23 = vadd.f32 %v2640_v29, %v2639_v47 }
 0x32b   :  { %v2279_v20 = vadd.f32 %v2638_v45, %v2182_v49  ;;  %v2185_v32 = vadd.f32 %v2577_v50, %v3479_v42 }
 0x32d   :  { %2311 = vst [vmem:[#allocation7 + $0x50] sm:$0xff] %v2279_v20  ;;  %v2282_v51 = vadd.f32 %v2641_v23, %v2185_v32  ;;  %v2578_v52 = vpop.f32.mrb[88].mxu0  ;;  %v2642_v54 = vpop.f32.mrb[88].mxu1 }
 0x32e   :  { %v2579_v55 = vpop.f32.mrb[89].mxu0  ;;  %v2643_v56 = vpop.f32.mrb[89].mxu1 }
 0x32f   :  { %2312 = vst [vmem:[#allocation7 + $0x58] sm:$0xff] %v2282_v51  ;;  %v2580_v57 = vadd.f32 %v2579_v55, %v2578_v52  ;;  %v2644_v60 = vadd.f32 %v2643_v56, %v2642_v54  ;;  %v2581_v61 = vpop.f32.mrb[90].mxu0  ;;  %v2645_v62 = vpop.f32.mrb[90].mxu1 }
 0x330   :  { %v2582_v1 = vpop.f32.mrb[91].mxu0  ;;  %v2646_v2 = vpop.f32.mrb[91].mxu1 }
 0x331   :  { %v2190_v4 = vadd.f32 %v2580_v57, %v3479_v42  ;;  %v2583_v5 = vadd.f32 %v2582_v1, %v2581_v61  ;;  %v2647_v6 = vadd.f32 %v2646_v2, %v2645_v62 }
 0x333   :  { %v2287_v7 = vadd.f32 %v2644_v60, %v2190_v4  ;;  %v2193_v38 = vadd.f32 %v2583_v5, %v3479_v42 }
 0x335   :  { %2313 = vst [vmem:[#allocation7 + $0x60] sm:$0xff] %v2287_v7  ;;  %v2290_v9 = vadd.f32 %v2647_v6, %v2193_v38  ;;  %v2584_v41 = vpop.f32.mrb[92].mxu0  ;;  %v2648_v10 = vpop.f32.mrb[92].mxu1 }
 0x336   :  { %v2585_v11 = vpop.f32.mrb[93].mxu0  ;;  %v2649_v18 = vpop.f32.mrb[93].mxu1 }
 0x337   :  { %2314 = vst [vmem:[#allocation7 + $0x68] sm:$0xff] %v2290_v9  ;;  %v2586_v12 = vadd.f32 %v2585_v11, %v2584_v41  ;;  %v2650_v13 = vadd.f32 %v2649_v18, %v2648_v10  ;;  %v2587_v15 = vpop.f32.mrb[94].mxu0  ;;  %v2651_v16 = vpop.f32.mrb[94].mxu1 }
 0x338   :  { %v2588_v0 = vpop.f32.mrb[95].mxu0  ;;  %v2652_v19 = vpop.f32.mrb[95].mxu1 }
 0x339   :  { %v2198_v14 = vadd.f32 %v2586_v12, %v3479_v42  ;;  %v2589_v53 = vadd.f32 %v2588_v0, %v2587_v15  ;;  %v2653_v63 = vadd.f32 %v2652_v19, %v2651_v16 }
 0x33b   :  { %v2295_v59 = vadd.f32 %v2650_v13, %v2198_v14  ;;  %v2201_v22 = vadd.f32 %v2589_v53, %v3479_v42 }
 0x33d   :  { %2315 = vst [vmem:[#allocation7 + $0x70] sm:$0xff] %v2295_v59  ;;  %v2298_v39 = vadd.f32 %v2653_v63, %v2201_v22 }
 0x33f   :  { %2316 = vst [vmem:[#allocation7 + $0x78] sm:$0xff] %v2298_v39 }
 0x340   :  { %3083 = shalt.err (!%p3080_p6)
}
 0x341   :  { %s3084_s29 = scalar_lea.hbm %s3516_s7, 2048 }
 0x342   :  { %p3085_p7 = scmp.ne.s32.totalorder %s3516_s7, %s3084_s29  ;;  %p3088_p8 = scmp.lt.u32.totalorder %s3084_s29, %s3516_s7 }
 0x344   :  { %p3090_p9 = pnand %p3088_p8, %p3085_p7 }
 0x346   :  { %3093 = shalt.err (!%p3090_p9)
}
 0x347   :  { %s3108_s10 = smov 128   ;;  %s3109_s11 = smov 8  }
 0x348   :  { %2328 = dma.vmem_to_hbm [thread:$0]  %s2323_s25, 2048, %s3516_s7, [#allocation4], %s3108_s10, %s3108_s10, %s3109_s11  }
 0x349   :  { %3098 = dma.done.wait [#allocation4], 2048  }
 0x34a   :  { %3099 = vsyncadd [#allocation4], 4294965248 }
 0x34b   :  { %2332 = vsyncpa [#allocation3], 1 }
 0x34c   :  { %2333 = vsyncpa [#allocation6], 1 }
 0x34d   :  { %2334 = vsyncpa [#allocation4], 1 }

</bundles_post_ra>
